<compile_context>
chip_gen: v5e
topology: v5e:2x2
jax: 0.10.0
libtpu: 0.0.40
codegen_flags: <defaults>
</compile_context>

<pallas_src>
import functools

import jax
import jax.numpy as jnp
from jax.experimental import pallas as pl
from jax.experimental.pallas import tpu as pltpu


def _upsample_kernel(x_ref, m_ref, o_ref, *, num_parts):
    # x_ref: (rb, K)       block of flattened input strips
    # m_ref: (K, f*f*K)    bf16 one-hot replication matrix (VMEM-resident;
    #                      constant index_map -> fetched once, reused)
    # o_ref: (rb, f*f*K)   block of flattened output strips
    m = m_ref[...]
    if num_parts == 1:
        # bf16 inputs: a one-hot bf16 matmul with f32 accumulation is an exact
        # copy of the input values (exactly one nonzero term per output).
        y = jnp.dot(x_ref[...].astype(jnp.bfloat16), m,
                    preferred_element_type=jnp.float32)
    else:
        # Exact multi-part bf16 split: x == p0 + p1 (+ p2) in f32.  Each part
        # goes through an exact one-hot bf16 matmul; parts are re-summed in
        # f32 low->high, reconstructing x exactly for normal floats.
        x = x_ref[...].astype(jnp.float32)
        parts = []
        rem = x
        for _ in range(num_parts):
            p = rem.astype(jnp.bfloat16)
            parts.append(p)
            rem = rem - p.astype(jnp.float32)
        y = jnp.dot(parts[-1], m, preferred_element_type=jnp.float32)
        for p in reversed(parts[:-1]):
            y = y + jnp.dot(p, m, preferred_element_type=jnp.float32)
    o_ref[...] = y.astype(o_ref.dtype)


def _pick_strip_rows(H, W, f, max_matrix_bytes=4 << 20):
    """Rows-per-strip g (divides H): make K = g*W lane-dense (>=128 when
    possible) while keeping the resident (K, f*f*K) bf16 one-hot matrix small."""
    best = 1
    for g in range(1, H + 1):
        if H % g:
            continue
        K = g * W
        if 2 * K * (f * f * K) > max_matrix_bytes:
            break  # matrix size grows monotonically with g
        best = g
        if K >= 512:
            break  # already plenty lane-dense
    return best


def upsample2d_nearest(x, factor=2, mode="nearest"):
    """Nearest-neighbor integer-factor upsampling of an NCHW tensor (Pallas)."""
    if mode != "nearest":
        # TODO(synk): bilinear/bicubic modes need an interpolation kernel.
        raise NotImplementedError(f"mode={mode!r} not implemented")
    if x.ndim != 4:
        raise ValueError(f"expected NCHW input, got shape {x.shape}")
    f = int(factor)
    if f != factor or f < 1:
        # TODO(synk): non-integer scale factors need a gather-style kernel.
        raise NotImplementedError("only positive integer scale factors supported")
    if f == 1:
        return x

    if x.dtype == jnp.bfloat16:
        num_parts = 1
    elif x.dtype == jnp.float16:
        num_parts = 2
    elif x.dtype == jnp.float32:
        num_parts = 3
    else:
        # TODO(synk): integer / float64 dtypes need a non-MXU replication path.
        raise NotImplementedError(f"unsupported dtype {x.dtype}")

    N, C, H, W = x.shape
    Hf, Wf = H * f, W * f
    itemsize = x.dtype.itemsize

    # --- strip flattening: input (R, K), output (R, f*f*K) -------------------
    g = _pick_strip_rows(H, W, f)
    K = g * W
    Nout = f * f * K
    R = N * C * (H // g)

    mat_bytes = 2 * K * Nout  # bf16
    if mat_bytes > (12 << 20):
        # TODO(synk): very wide rows would need width tiling of the replication
        # matrix; not needed for toy-GAN image sizes.
        raise NotImplementedError("image rows too wide for resident one-hot matrix")

    # --- resident one-hot replication matrix (built once, outside kernel) ----
    # Output strip element q = (j*f + a)*Wf + v  comes from input strip element
    # src(q) = j*W + v//f   (j = source row within the strip, a = row replica).
    q = jnp.arange(Nout, dtype=jnp.int32)
    src = (q // Wf) // f * W + (q % Wf) // f
    m = (jnp.arange(K, dtype=jnp.int32)[:, None] == src[None, :]).astype(jnp.bfloat16)

    # --- block sizing: multi-MiB blocks within an explicit VMEM budget -------
    vmem_limit = 32 * 1024 * 1024  # <= v6e/v7x default scoped limit; > v5e's 16 MiB
    pair_budget = min(8 << 20,
                      max(1 << 20, (vmem_limit - 2 * mat_bytes - (4 << 20)) // 2))
    row_pair_bytes = (K + Nout) * itemsize
    align = {4: 8, 2: 16, 1: 32}.get(itemsize, 8)

    rb = max(1, pair_budget // row_pair_bytes)
    if R >= 2 * align:
        # Keep >=2 grid steps when possible so v7x can shard the parallel axis.
        rb = min(rb, (R + 1) // 2)
    if rb >= R:
        rb = R                                  # block == full dim is always legal
    else:
        rb = max(align, (rb // align) * align)  # (8,128)-rule on partial blocks
    grid_steps = pl.cdiv(R, rb)                 # ragged final block is fine: the
                                                # compute is row-independent.

    xr = x.reshape(R, K)                        # contiguous -> free reshape
    kernel = functools.partial(_upsample_kernel, num_parts=num_parts)

    cost = pl.CostEstimate(
        flops=R * Nout,                         # effectively a copy: memory-bound
        transcendentals=0,
        bytes_accessed=R * K * itemsize + mat_bytes + R * Nout * itemsize,
    )

    out2d = pl.pallas_call(
        kernel,
        out_shape=jax.ShapeDtypeStruct((R, Nout), x.dtype),
        grid_spec=pltpu.PrefetchScalarGridSpec(
            num_scalar_prefetch=0,
            grid=(grid_steps,),
            in_specs=[
                pl.BlockSpec((rb, K), lambda i: (i, 0)),
                pl.BlockSpec((K, Nout), lambda i: (0, 0)),  # constant -> resident
            ],
            out_specs=pl.BlockSpec((rb, Nout), lambda i: (i, 0)),
        ),
        compiler_params=pltpu.CompilerParams(
            dimension_semantics=("parallel",),
            vmem_limit_bytes=vmem_limit,
        ),
        cost_estimate=cost,
    )(xr, m)

    # (R, f*f*K) row-major is exactly the NCHW output layout -> free reshape.
    return out2d.reshape(N, C, Hf, Wf)


def _reference_upsample(x, factor=2):
    # Pure-JAX reference identical to F.interpolate(..., mode='nearest').
    y = jnp.repeat(x, factor, axis=2)
    return jnp.repeat(y, factor, axis=3)


if __name__ == "__main__":
    # Upsample2d has no learnable parameters (factor=2, mode='nearest').
    key = jax.random.PRNGKey(0)

    # Toy-GAN shape: NCHW (2, 4, 16, 16), float32 -> bit-exact 3-part path.
    x = jax.random.normal(key, (2, 4, 16, 16), dtype=jnp.float32)
    out = jax.block_until_ready(upsample2d_nearest(x, factor=2))
    ref = _reference_upsample(x, factor=2)
    assert out.shape == (2, 4, 32, 32), out.shape
    assert out.dtype == x.dtype
    assert bool(jnp.array_equal(out, ref)), "f32 Pallas upsample mismatch"

    # bf16 fast path (single one-hot matmul, no split).
    xb = x.astype(jnp.bfloat16)
    outb = jax.block_until_ready(upsample2d_nearest(xb, factor=2))
    assert outb.dtype == jnp.bfloat16
    assert bool(jnp.array_equal(outb, _reference_upsample(xb, 2))), "bf16 mismatch"

    # Larger input: exercises the multi-step pipelined grid + ragged last block.
    x2 = jax.random.normal(jax.random.PRNGKey(0), (8, 8, 128, 128), dtype=jnp.float32)
    out2 = jax.block_until_ready(upsample2d_nearest(x2, factor=2))
    assert out2.shape == (8, 8, 256, 256), out2.shape
    assert bool(jnp.array_equal(out2, _reference_upsample(x2, 2))), "large mismatch"

    print("KERNEL_OK")
</pallas_src>

<mosaic_0001>
module attributes {stable_mosaic.version = 11 : i64} {
  func.func @_upsample_kernel(%arg0: i32, %arg1: memref<8x256xf32, #tpu.memory_space<vmem>>, %arg2: memref<256x1024xbf16, #tpu.memory_space<vmem>>, %arg3: memref<8x1024xf32, #tpu.memory_space<vmem>>) attributes {dimension_semantics = [#tpu.dimension_semantics<parallel>], iteration_bounds = array<i64: 1>, scalar_prefetch = 0 : i64, scratch_operands = 0 : i64, tpu.core_type = #tpu.core_type<tc>, window_params = [{transform_indices = @transform_0, window_bounds = array<i64: 8, 256>}, {pipeline_mode = #tpu.pipeline_mode<synchronous>, transform_indices = @transform_1, window_bounds = array<i64: 256, 1024>}, {transform_indices = @transform_2, window_bounds = array<i64: 8, 1024>}]} {
    %c0 = arith.constant 0 : index
    %c0_0 = arith.constant 0 : index
    %0 = vector.load %arg2[%c0, %c0_0] : memref<256x1024xbf16, #tpu.memory_space<vmem>>, vector<256x1024xbf16>
    %c0_1 = arith.constant 0 : index
    %c0_2 = arith.constant 0 : index
    %1 = vector.load %arg1[%c0_1, %c0_2] : memref<8x256xf32, #tpu.memory_space<vmem>>, vector<8x256xf32>
    %2 = arith.truncf %1 : vector<8x256xf32> to vector<8x256xbf16>
    %3 = arith.extf %2 : vector<8x256xbf16> to vector<8x256xf32>
    %4 = arith.subf %1, %3 : vector<8x256xf32>
    %5 = arith.truncf %4 : vector<8x256xf32> to vector<8x256xbf16>
    %6 = arith.extf %5 : vector<8x256xbf16> to vector<8x256xf32>
    %7 = arith.subf %4, %6 : vector<8x256xf32>
    %8 = arith.truncf %7 : vector<8x256xf32> to vector<8x256xbf16>
    %cst = arith.constant dense<0.000000e+00> : vector<8x1024xf32>
    %9 = tpu.matmul %8, %0, %cst {dimension_numbers = #tpu.dot_dimension_numbers<[1], [0], [0], [1], [0, 0, 1, 1], [], []>} : vector<8x256xbf16>, vector<256x1024xbf16>, vector<8x1024xf32> -> vector<8x1024xf32>
    %cst_3 = arith.constant dense<0.000000e+00> : vector<8x1024xf32>
    %10 = tpu.matmul %5, %0, %cst_3 {dimension_numbers = #tpu.dot_dimension_numbers<[1], [0], [0], [1], [0, 0, 1, 1], [], []>} : vector<8x256xbf16>, vector<256x1024xbf16>, vector<8x1024xf32> -> vector<8x1024xf32>
    %11 = arith.addf %9, %10 : vector<8x1024xf32>
    %cst_4 = arith.constant dense<0.000000e+00> : vector<8x1024xf32>
    %12 = tpu.matmul %2, %0, %cst_4 {dimension_numbers = #tpu.dot_dimension_numbers<[1], [0], [0], [1], [0, 0, 1, 1], [], []>} : vector<8x256xbf16>, vector<256x1024xbf16>, vector<8x1024xf32> -> vector<8x1024xf32>
    %13 = arith.addf %11, %12 : vector<8x1024xf32>
    %c0_5 = arith.constant 0 : index
    %c0_6 = arith.constant 0 : index
    %14 = vector.load %arg3[%c0_5, %c0_6] : memref<8x1024xf32, #tpu.memory_space<vmem>>, vector<8x1024xf32>
    tpu.vector_store %arg3[%c0_5, %c0_6], %13 {strides = array<i32>} : memref<8x1024xf32, #tpu.memory_space<vmem>>, vector<8x1024xf32>,
    return
  }
  func.func @transform_0(%arg0: i32) -> (i32, i32) {
    %c0_i32 = arith.constant 0 : i32
    %c0_i32_0 = arith.constant 0 : i32
    return %arg0, %c0_i32 : i32, i32
  }
  func.func @transform_1(%arg0: i32) -> (i32, i32) {
    %c0_i32 = arith.constant 0 : i32
    %c0_i32_0 = arith.constant 0 : i32
    %c0_i32_1 = arith.constant 0 : i32
    return %c0_i32, %c0_i32_0 : i32, i32
  }
  func.func @transform_2(%arg0: i32) -> (i32, i32) {
    %c0_i32 = arith.constant 0 : i32
    %c0_i32_0 = arith.constant 0 : i32
    return %arg0, %c0_i32 : i32, i32
  }
}

</mosaic_0001>

<bundles_post_ra>
// kernel: tpu_custom_call.1
= control target key start
LH: loop header
LB: loop body
LE: loop exit
PB: predicated region body
PF: predicated region fallthrough
CT: control target
= control target key end

     0   :  { %7 = vsyncpa [#allocation3], 0  ;;  %s3010_s0 = inlined_call_operand.hbm [shape: f32[8,256], index: 0, kind: input, shape index: {}]   ;;  %s3011_s1 = inlined_call_operand.hbm [shape: bf16[256,1024], index: 1, kind: input, shape index: {}]   ;;  %s3012_s2 = inlined_call_operand.hbm [shape: f32[8,1024], index: 2, kind: output, shape index: {}]  }
   0x1   :  { %8 = vsyncpa [#allocation6], 0 }
   0x2   :  { %9 = vsyncpa [#allocation4], 0  ;;  %s15_s11 = sshll.u32 %s3010_s0, 4  ;;  %s2219_s12 = smov [#allocation2]   ;;  %s16_s11 = int_to_ptr.hbm [resolvable:$true] %s15_s11 }
   0x3   :  { %s17_s13 = sshll.u32 %s2219_s12, 4  ;;  %s25_s16 = sshll.u32 %s3011_s1, 4  ;;  %s18_s13 = int_to_ptr.vmem [resolvable:$true] %s17_s13  ;;  %s26_s16 = int_to_ptr.hbm [resolvable:$true] %s25_s16 }
   0x4   :  { %20 = dma.hbm_to_vmem [thread:$0]  %s16_s11, 256, %s18_s13, [#allocation3]  }
   0x5   :  { %s2220_s17 = smov [#allocation5]   ;;  %s2221_s19 = smov 512  }
   0x6   :  { %s27_s18 = sshll.u32 %s2220_s17, 4  ;;  %s2222_s20 = smov 32   ;;  %s28_s18 = int_to_ptr.vmem [resolvable:$true] %s27_s18 }
   0x7   :  { %33 = dma.hbm_to_vmem [thread:$0]  %s26_s16, 16384, %s28_s18, [#allocation6], %s2221_s19, %s2221_s19, %s2222_s20  }
   0x8   :  { %2213 = dma.done.wait [#allocation3], 256  }
   0x9   :  { %2214 = vsyncadd [#allocation3], 4294967040 }
   0xa   :  { %2215 = dma.done.wait [#allocation6], 16384  }
   0xb   :  { %2216 = vsyncadd [#allocation6], 4294950912  ;;  %v1722_v0 = vld [vmem:[#allocation5 + $0x1c0] sm:$0xf]  ;;  %v2064_v5 = vld [vmem:[#allocation5 + $0x1c4] sm:$0xf] }
   0xc   :  { %v2068_v1 = vld [vmem:[#allocation5 + $0x1dc] sm:$0xf0]  ;;  %v1724_v6 = vld [vmem:[#allocation5 + $0x1e0] sm:$0xf0]  ;;  %s2223_s0 = smov [#allocation7]   ;;  %s1485_s23 = sshll.u32 %s3012_s2, 4  ;;  %s1486_s23 = int_to_ptr.hbm [resolvable:$true] %s1485_s23 }
   0xd   :  { %v1978_v2 = vld [vmem:[#allocation5 + $0x3c0] sm:$0xf]  ;;  %v2245_v3 = vor.u32 %v2068_v1, %v1722_v0  ;;  %v2249_v8 = vor.u32 %v2064_v5, %v1724_v6  ;;  %v2128_v9 = vld [vmem:[#allocation5 + $0x3c4] sm:$0xf]  ;;  %s1483_s1 = sshll.u32 %s2223_s0, 4  ;;  %s1484_s1 = int_to_ptr.vmem [resolvable:$true] %s1483_s1 }
   0xe   :  { %v2132_v4 = vld [vmem:[#allocation5 + $0x3dc] sm:$0xf0]  ;;  %v1980_v10 = vld [vmem:[#allocation5 + $0x3e0] sm:$0xf0] }
   0xf   :  { %v2247_v7 = vor.u32 %v2132_v4, %v1978_v2  ;;  %v1690_v11 = vld [vmem:[#allocation5 + $0x180] sm:$0xf]  ;;  %831 = vmatpush.bf16.msra.mxu0 %v2245_v3  ;;  %v2252_v12 = vor.u32 %v2128_v9, %v1980_v10  ;;  %857 = vmatpush.bf16.msra.mxu2 %v2249_v8  ;;  %v2056_v18 = vld [vmem:[#allocation5 + $0x184] sm:$0xf] }
  0x10   :  { %v2060_v13 = vld [vmem:[#allocation5 + $0x19c] sm:$0xf0]  ;;  %v1692_v19 = vld [vmem:[#allocation5 + $0x1a0] sm:$0xf0] }
  0x11   :  { %v1946_v14 = vld [vmem:[#allocation5 + $0x380] sm:$0xf]  ;;  %844 = vmatpush.bf16.msra.mxu1 %v2247_v7  ;;  %v2256_v16 = vor.u32 %v2060_v13, %v1690_v11  ;;  %v2120_v20 = vld [vmem:[#allocation5 + $0x384] sm:$0xf]  ;;  %870 = vmatpush.bf16.msra.mxu3 %v2252_v12  ;;  %v2261_v21 = vor.u32 %v2056_v18, %v1692_v19 }
  0x12   :  { %v2124_v15 = vld [vmem:[#allocation5 + $0x39c] sm:$0xf0]  ;;  %v1948_v22 = vld [vmem:[#allocation5 + $0x3a0] sm:$0xf0] }
  0x13   :  { %v2258_v17 = vor.u32 %v2124_v15, %v1946_v14  ;;  %v1658_v23 = vld [vmem:[#allocation5 + $0x140] sm:$0xf]  ;;  %v2263_v25 = vor.u32 %v2120_v20, %v1948_v22  ;;  %v2048_v28 = vld [vmem:[#allocation5 + $0x144] sm:$0xf]  ;;  %832 = vmatpush.bf16.msra.mxu0 %v2256_v16  ;;  %858 = vmatpush.bf16.msra.mxu2 %v2261_v21 }
  0x14   :  { %v2052_v24 = vld [vmem:[#allocation5 + $0x15c] sm:$0xf0]  ;;  %v1660_v30 = vld [vmem:[#allocation5 + $0x160] sm:$0xf0] }
  0x15   :  { %v1914_v26 = vld [vmem:[#allocation5 + $0x340] sm:$0xf]  ;;  %v2266_v29 = vor.u32 %v2052_v24, %v1658_v23  ;;  %v2112_v31 = vld [vmem:[#allocation5 + $0x344] sm:$0xf]  ;;  %845 = vmatpush.bf16.msra.mxu1 %v2258_v17  ;;  %v2272_v34 = vor.u32 %v2048_v28, %v1660_v30  ;;  %871 = vmatpush.bf16.msra.mxu3 %v2263_v25 }
  0x16   :  { %v2116_v27 = vld [vmem:[#allocation5 + $0x35c] sm:$0xf0]  ;;  %v1916_v32 = vld [vmem:[#allocation5 + $0x360] sm:$0xf0] }
  0x17   :  { %v2270_v33 = vor.u32 %v2116_v27, %v1914_v26  ;;  %v1626_v35 = vld [vmem:[#allocation5 + $0x100] sm:$0xf]  ;;  %v2275_v38 = vor.u32 %v2112_v31, %v1916_v32  ;;  %v2040_v40 = vld [vmem:[#allocation5 + $0x104] sm:$0xf]  ;;  %833 = vmatpush.bf16.msra.mxu0 %v2266_v29  ;;  %859 = vmatpush.bf16.msra.mxu2 %v2272_v34 }
  0x18   :  { %v2044_v36 = vld [vmem:[#allocation5 + $0x11c] sm:$0xf0]  ;;  %v1628_v41 = vld [vmem:[#allocation5 + $0x120] sm:$0xf0] }
  0x19   :  { %v1882_v37 = vld [vmem:[#allocation5 + $0x300] sm:$0xf]  ;;  %v2104_v42 = vld [vmem:[#allocation5 + $0x304] sm:$0xf]  ;;  %v2278_v44 = vor.u32 %v2044_v36, %v1626_v35  ;;  %846 = vmatpush.bf16.msra.mxu1 %v2270_v33  ;;  %v2284_v46 = vor.u32 %v2040_v40, %v1628_v41  ;;  %872 = vmatpush.bf16.msra.mxu3 %v2275_v38  ;;  %v1730_v40 = vld [vmem:[#allocation5 + $0x1c8] sm:$0xf] }
  0x1a   :  { %v2108_v39 = vld [vmem:[#allocation5 + $0x31c] sm:$0xf0]  ;;  %v1884_v43 = vld [vmem:[#allocation5 + $0x320] sm:$0xf0]  ;;  %v2069_v41 = vld [vmem:[#allocation5 + $0x1e4] sm:$0xf0] }
  0x1b   :  { %v2282_v45 = vor.u32 %v2108_v39, %v1882_v37  ;;  %v1594_v47 = vld [vmem:[#allocation5 + $0xc0] sm:$0xf]  ;;  %v2287_v50 = vor.u32 %v2104_v42, %v1884_v43  ;;  %v2032_v52 = vld [vmem:[#allocation5 + $0xc4] sm:$0xf]  ;;  %834 = vmatpush.bf16.msra.mxu0 %v2278_v44  ;;  %860 = vmatpush.bf16.msra.mxu2 %v2284_v46  ;;  %v1986_v42 = vld [vmem:[#allocation5 + $0x3c8] sm:$0xf] }
  0x1c   :  { %v2036_v48 = vld [vmem:[#allocation5 + $0xdc] sm:$0xf0]  ;;  %v1596_v53 = vld [vmem:[#allocation5 + $0xe0] sm:$0xf0] }
  0x1d   :  { %v1850_v49 = vld [vmem:[#allocation5 + $0x2c0] sm:$0xf]  ;;  %v2096_v54 = vld [vmem:[#allocation5 + $0x2c4] sm:$0xf]  ;;  %v2290_v56 = vor.u32 %v2036_v48, %v1594_v47  ;;  %847 = vmatpush.bf16.msra.mxu1 %v2282_v45  ;;  %v2296_v58 = vor.u32 %v2032_v52, %v1596_v53  ;;  %873 = vmatpush.bf16.msra.mxu3 %v2287_v50  ;;  %v2133_v47 = vld [vmem:[#allocation5 + $0x3e4] sm:$0xf0] }
  0x1e   :  { %v2100_v51 = vld [vmem:[#allocation5 + $0x2dc] sm:$0xf0]  ;;  %v1852_v55 = vld [vmem:[#allocation5 + $0x2e0] sm:$0xf0]  ;;  %v2065_v48 = vld [vmem:[#allocation5 + $0x1cc] sm:$0xf] }
  0x1f   :  { %v2294_v57 = vor.u32 %v2100_v51, %v1850_v49  ;;  %v1562_v59 = vld [vmem:[#allocation5 + $0x80] sm:$0xf]  ;;  %v2299_v62 = vor.u32 %v2096_v54, %v1852_v55  ;;  %v2024_v0 = vld [vmem:[#allocation5 + $0x84] sm:$0xf]  ;;  %835 = vmatpush.bf16.msra.mxu0 %v2290_v56  ;;  %861 = vmatpush.bf16.msra.mxu2 %v2296_v58  ;;  %v1732_v49 = vld [vmem:[#allocation5 + $0x1e8] sm:$0xf0] }
  0x20   :  { %v2028_v60 = vld [vmem:[#allocation5 + $0x9c] sm:$0xf0]  ;;  %v1564_v1 = vld [vmem:[#allocation5 + $0xa0] sm:$0xf0]  ;;  %v2129_v53 = vld [vmem:[#allocation5 + $0x3cc] sm:$0xf] }
  0x21   :  { %v1818_v61 = vld [vmem:[#allocation5 + $0x280] sm:$0xf]  ;;  %v2088_v2 = vld [vmem:[#allocation5 + $0x284] sm:$0xf]  ;;  %v2302_v5 = vor.u32 %v2028_v60, %v1562_v59  ;;  %848 = vmatpush.bf16.msra.mxu1 %v2294_v57  ;;  %v2308_v9 = vor.u32 %v2024_v0, %v1564_v1  ;;  %874 = vmatpush.bf16.msra.mxu3 %v2299_v62  ;;  %v1988_v54 = vld [vmem:[#allocation5 + $0x3e8] sm:$0xf0]  ;;  %v2337_v59 = vor.u32 %v2069_v41, %v1730_v40 }
  0x22   :  { %v2092_v63 = vld [vmem:[#allocation5 + $0x29c] sm:$0xf0]  ;;  %v1820_v4 = vld [vmem:[#allocation5 + $0x2a0] sm:$0xf0]  ;;  %v2339_v60 = vor.u32 %v2133_v47, %v1986_v42  ;;  %v2061_v0 = vld [vmem:[#allocation5 + $0x1a4] sm:$0xf0] }
  0x23   :  { %v2306_v6 = vor.u32 %v2092_v63, %v1818_v61  ;;  %v1530_v10 = vld [vmem:[#allocation5 + $0x40] sm:$0xf]  ;;  %v2311_v14 = vor.u32 %v2088_v2, %v1820_v4  ;;  %v2016_v18 = vld [vmem:[#allocation5 + $0x44] sm:$0xf]  ;;  %836 = vmatpush.bf16.msra.mxu0 %v2302_v5  ;;  %862 = vmatpush.bf16.msra.mxu2 %v2308_v9  ;;  %v2341_v61 = vor.u32 %v2065_v48, %v1732_v49  ;;  %v1698_v63 = vld [vmem:[#allocation5 + $0x188] sm:$0xf] }
  0x24   :  { %v2020_v11 = vld [vmem:[#allocation5 + $0x5c] sm:$0xf0]  ;;  %v1532_v19 = vld [vmem:[#allocation5 + $0x60] sm:$0xf0]  ;;  %3180 = vst [vmem:[#allocation11_spill] sm:$0xff] %v2339_v60  ;;  %v2344_v2 = vor.u32 %v2129_v53, %v1988_v54  ;;  %v170_v42 = vld [vmem:[#allocation2] sm:$0xff] }
  0x25   :  { %v1786_v13 = vld [vmem:[#allocation5 + $0x240] sm:$0xf]  ;;  %v2080_v20 = vld [vmem:[#allocation5 + $0x244] sm:$0xf]  ;;  %v2314_v23 = vor.u32 %v2020_v11, %v1530_v10  ;;  %849 = vmatpush.bf16.msra.mxu1 %v2306_v6  ;;  %v2320_v28 = vor.u32 %v2016_v18, %v1532_v19  ;;  %875 = vmatpush.bf16.msra.mxu3 %v2311_v14  ;;  %3181 = vst [vmem:[#allocation12_spill] sm:$0xff] %v2341_v61  ;;  %v171_v47 = vld [vmem:[#allocation2 + $0x8] sm:$0xff] }
  0x26   :  { %v2084_v15 = vld [vmem:[#allocation5 + $0x25c] sm:$0xf0]  ;;  %v1788_v22 = vld [vmem:[#allocation5 + $0x260] sm:$0xf0]  ;;  %v1954_v1 = vld [vmem:[#allocation5 + $0x388] sm:$0xf]  ;;  %v2350_v18 = vor.u32 %v2061_v0, %v1698_v63  ;;  %v2370_v0 = vpack.c.bf16 %v171_v47, %v170_v42 }
  0x27   :  { %v1498_v24 = vld [vmem:[#allocation5] sm:$0xf]  ;;  %v2318_v27 = vor.u32 %v2084_v15, %v1786_v13  ;;  %v2008_v32 = vld [vmem:[#allocation5 + $0x4] sm:$0xf]  ;;  %v2323_v35 = vor.u32 %v2080_v20, %v1788_v22  ;;  %837 = vmatpush.bf16.msra.mxu0 %v2314_v23  ;;  %863 = vmatpush.bf16.msra.mxu2 %v2320_v28  ;;  %3182 = vst [vmem:[#allocation13_spill] sm:$0xff] %v2344_v2 }
  0x28   :  { %v2012_v26 = vld [vmem:[#allocation5 + $0x1c] sm:$0xf0]  ;;  %v1500_v36 = vld [vmem:[#allocation5 + $0x20] sm:$0xf0]  ;;  %v2125_v4 = vld [vmem:[#allocation5 + $0x3a4] sm:$0xf0] }
  0x29   :  { %v1754_v30 = vld [vmem:[#allocation5 + $0x200] sm:$0xf]  ;;  %v2072_v37 = vld [vmem:[#allocation5 + $0x204] sm:$0xf]  ;;  %v2326_v43 = vor.u32 %v2012_v26, %v1498_v24  ;;  %850 = vmatpush.bf16.msra.mxu1 %v2318_v27  ;;  %v2332_v52 = vor.u32 %v2008_v32, %v1500_v36  ;;  %876 = vmatpush.bf16.msra.mxu3 %v2323_v35  ;;  %v2057_v10 = vld [vmem:[#allocation5 + $0x18c] sm:$0xf]  ;;  %v2354_v19 = vor.u32 %v2125_v4, %v1954_v1 }
  0x2a   :  { %v2076_v31 = vld [vmem:[#allocation5 + $0x21c] sm:$0xf0]  ;;  %v1756_v39 = vld [vmem:[#allocation5 + $0x220] sm:$0xf0]  ;;  %v1700_v11 = vld [vmem:[#allocation5 + $0x1a8] sm:$0xf0] }
  0x2b   :  { %v2330_v51 = vor.u32 %v2076_v31, %v1754_v30  ;;  %v2335_v55 = vor.u32 %v2072_v37, %v1756_v39  ;;  %838 = vmatpush.bf16.msra.mxu0 %v2326_v43  ;;  %864 = vmatpush.bf16.msra.mxu2 %v2332_v52  ;;  %v2121_v13 = vld [vmem:[#allocation5 + $0x38c] sm:$0xf]  ;;  %3183 = vst [vmem:[#allocation14_spill] sm:$0xff] %v2350_v18  ;;  %v1666_v22 = vld [vmem:[#allocation5 + $0x148] sm:$0xf] }
  0x2c   :  { %v1956_v15 = vld [vmem:[#allocation5 + $0x3a8] sm:$0xf0]  ;;  %3184 = vst [vmem:[#allocation15_spill] sm:$0xff] %v2354_v19  ;;  %v2356_v20 = vor.u32 %v2057_v10, %v1700_v11  ;;  %v2053_v24 = vld [vmem:[#allocation5 + $0x164] sm:$0xf0] }
  0x2d   :  { %851 = vmatpush.bf16.msra.mxu1 %v2330_v51  ;;  %877 = vmatpush.bf16.msra.mxu3 %v2335_v55  ;;  %v1922_v26 = vld [vmem:[#allocation5 + $0x348] sm:$0xf]  ;;  %v2359_v30 = vor.u32 %v2121_v13, %v1956_v15  ;;  %v2049_v32 = vld [vmem:[#allocation5 + $0x14c] sm:$0xf]  ;;  %v2362_v40 = vor.u32 %v2053_v24, %v1666_v22  ;;  %3190 = vst [vmem:[#allocation21_spill] sm:$0xff] %v2370_v0  ;;  %v173_v15 = vunpack.c.l.bf16 %v2370_v0  ;;  %v174_v22 = vunpack.c.h.bf16 %v2370_v0 }
  0x2e   :  { %3185 = vst [vmem:[#allocation16_spill] sm:$0xff] %v2356_v20  ;;  %v2117_v31 = vld [vmem:[#allocation5 + $0x364] sm:$0xf0]  ;;  %v1668_v36 = vld [vmem:[#allocation5 + $0x168] sm:$0xf0] }
  0x2f   :  { %883 = vmatpush.bf16.msrb.mxu0 %v2337_v59  ;;  %909 = vmatpush.bf16.msrb.mxu2 %v2341_v61  ;;  %3186 = vst [vmem:[#allocation17_spill] sm:$0xff] %v2359_v30  ;;  %v2113_v37 = vld [vmem:[#allocation5 + $0x34c] sm:$0xf]  ;;  %v1634_v41 = vld [vmem:[#allocation5 + $0x108] sm:$0xf]  ;;  %v2366_v48 = vor.u32 %v2117_v31, %v1922_v26  ;;  %v2368_v49 = vor.u32 %v2049_v32, %v1668_v36 }
  0x30   :  { %v1924_v39 = vld [vmem:[#allocation5 + $0x368] sm:$0xf0]  ;;  %3187 = vst [vmem:[#allocation18_spill] sm:$0xff] %v2362_v40  ;;  %v2045_v53 = vld [vmem:[#allocation5 + $0x124] sm:$0xf0] }
  0x31   :  { %896 = vmatpush.bf16.msrb.mxu1 %v2339_v60  ;;  %922 = vmatpush.bf16.msrb.mxu3 %v2344_v2  ;;  %3188 = vst [vmem:[#allocation19_spill] sm:$0xff] %v2366_v48  ;;  %v1890_v54 = vld [vmem:[#allocation5 + $0x308] sm:$0xf]  ;;  %v2373_v1 = vor.u32 %v2113_v37, %v1924_v39  ;;  %v2041_v4 = vld [vmem:[#allocation5 + $0x10c] sm:$0xf]  ;;  %v2378_v24 = vor.u32 %v2045_v53, %v1634_v41 }
  0x32   :  { %3189 = vst [vmem:[#allocation20_spill] sm:$0xff] %v2368_v49  ;;  %v2109_v63 = vld [vmem:[#allocation5 + $0x324] sm:$0xf0]  ;;  %v1636_v10 = vld [vmem:[#allocation5 + $0x128] sm:$0xf0]  ;;  %v2386_v39 = vsub.f32 %v170_v42, %v173_v15 }
  0x33   :  { %884 = vmatpush.bf16.msrb.mxu0 %v2350_v18  ;;  %910 = vmatpush.bf16.msrb.mxu2 %v2356_v20  ;;  %3191 = vst [vmem:[#allocation22_spill] sm:$0xff] %v2373_v1  ;;  %v2105_v11 = vld [vmem:[#allocation5 + $0x30c] sm:$0xf]  ;;  %v2380_v26 = vor.u32 %v2109_v63, %v1890_v54  ;;  %v2384_v31 = vor.u32 %v2041_v4, %v1636_v10  ;;  %v1602_v32 = vld [vmem:[#allocation5 + $0xc8] sm:$0xf] }
  0x34   :  { %v1892_v13 = vld [vmem:[#allocation5 + $0x328] sm:$0xf0]  ;;  %3192 = vst [vmem:[#allocation23_spill] sm:$0xff] %v2378_v24  ;;  %v2037_v36 = vld [vmem:[#allocation5 + $0xe4] sm:$0xf0] }
  0x35   :  { %897 = vmatpush.bf16.msrb.mxu1 %v2354_v19  ;;  %923 = vmatpush.bf16.msrb.mxu3 %v2359_v30  ;;  %3193 = vst [vmem:[#allocation24_spill] sm:$0xff] %v2380_v26  ;;  %v1858_v37 = vld [vmem:[#allocation5 + $0x2c8] sm:$0xf]  ;;  %v2388_v30 = vsub.f32 %v171_v47, %v174_v22  ;;  %v2391_v0 = vor.u32 %v2105_v11, %v1892_v13  ;;  %v2033_v53 = vld [vmem:[#allocation5 + $0xcc] sm:$0xf] }
  0x36   :  { %3194 = vst [vmem:[#allocation25_spill] sm:$0xff] %v2384_v31  ;;  %v2101_v41 = vld [vmem:[#allocation5 + $0x2e4] sm:$0xf0]  ;;  %v1604_v54 = vld [vmem:[#allocation5 + $0xe8] sm:$0xf0]  ;;  %v2398_v10 = vor.u32 %v2037_v36, %v1602_v32 }
  0x37   :  { %885 = vmatpush.bf16.msrb.mxu0 %v2362_v40  ;;  %911 = vmatpush.bf16.msrb.mxu2 %v2368_v49  ;;  %3195 = vst [vmem:[#allocation26_spill] sm:$0xff] %v2391_v0  ;;  %v2097_v63 = vld [vmem:[#allocation5 + $0x2cc] sm:$0xf]  ;;  %v2395_v4 = vpack.c.bf16 %v2388_v30, %v2386_v39  ;;  %v2402_v42 = vor.u32 %v2101_v41, %v1858_v37  ;;  %v1570_v11 = vld [vmem:[#allocation5 + $0x88] sm:$0xf] }
  0x38   :  { %3196 = vst [vmem:[#allocation27_spill] sm:$0xff] %v2398_v10  ;;  %v2404_v47 = vor.u32 %v2033_v53, %v1604_v54  ;;  %v2029_v13 = vld [vmem:[#allocation5 + $0xa4] sm:$0xf0]  ;;  %v2025_v36 = vld [vmem:[#allocation5 + $0x8c] sm:$0xf] }
  0x39   :  { %898 = vmatpush.bf16.msrb.mxu1 %v2366_v48  ;;  %924 = vmatpush.bf16.msrb.mxu3 %v2373_v1  ;;  %v1860_v48 = vld [vmem:[#allocation5 + $0x2e8] sm:$0xf0]  ;;  %3197 = vst [vmem:[#allocation28_spill] sm:$0xff] %v2402_v42  ;;  %v1826_v15 = vld [vmem:[#allocation5 + $0x288] sm:$0xf]  ;;  %v185_v22 = vunpack.c.l.b16 %v2395_v4  ;;  %v186_v1 = vunpack.c.h.b16 %v2395_v4  ;;  %v2416_v53 = vor.u32 %v2029_v13, %v1570_v11 }
  0x3a   :  { %3198 = vst [vmem:[#allocation29_spill] sm:$0xff] %v2404_v47  ;;  %v2093_v32 = vld [vmem:[#allocation5 + $0x2a4] sm:$0xf0]  ;;  %v2089_v49 = vld [vmem:[#allocation5 + $0x28c] sm:$0xf] }
  0x3b   :  { %886 = vmatpush.bf16.msrb.mxu0 %v2378_v24  ;;  %912 = vmatpush.bf16.msrb.mxu2 %v2384_v31  ;;  %v2409_v24 = vor.u32 %v2097_v63, %v1860_v48  ;;  %v1828_v31 = vld [vmem:[#allocation5 + $0x2a8] sm:$0xf0]  ;;  %v2411_v37 = vpack.c.b16 %v185_v22, %v185_v22  ;;  %v2413_v41 = vpack.c.b16 %v186_v1, %v186_v1  ;;  %v1538_v63 = vld [vmem:[#allocation5 + $0x48] sm:$0xf]  ;;  %v1738_v19 = vld [vmem:[#allocation5 + $0x1d0] sm:$0xf] }
  0x3c   :  { %3200 = vst [vmem:[#allocation31_spill] sm:$0xff] %v2416_v53  ;;  %v2420_v54 = vor.u32 %v2093_v32, %v1826_v15  ;;  %v1794_v40 = vld [vmem:[#allocation5 + $0x248] sm:$0xf]  ;;  %v2425_v22 = vor.u32 %v2089_v49, %v1828_v31  ;;  %v2017_v11 = vld [vmem:[#allocation5 + $0x4c] sm:$0xf] }
  0x3d   :  { %899 = vmatpush.bf16.msrb.mxu1 %v2380_v26  ;;  %925 = vmatpush.bf16.msrb.mxu3 %v2391_v0  ;;  %3199 = vst [vmem:[#allocation30_spill] sm:$0xff] %v2409_v24  ;;  %v1572_v26 = vld [vmem:[#allocation5 + $0xa8] sm:$0xf0]  ;;  %v2021_v0 = vld [vmem:[#allocation5 + $0x64] sm:$0xf0] }
  0x3e   :  { %3201 = vst [vmem:[#allocation32_spill] sm:$0xff] %v2420_v54  ;;  %v2422_v48 = vor.u32 %v2025_v36, %v1572_v26  ;;  %865 = vmatmul.bf16.vlgmr.msra.gmra.mxu2 %v2411_v37  ;;  %v2085_v1 = vld [vmem:[#allocation5 + $0x264] sm:$0xf0]  ;;  %v1540_v13 = vld [vmem:[#allocation5 + $0x68] sm:$0xf0]  ;;  %878 = vmatmul.bf16.vlgmr.msra.gmra.mxu3 %v2413_v41  ;;  %v2431_v26 = vor.u32 %v2021_v0, %v1538_v63 }
  0x3f   :  { %887 = vmatpush.bf16.msrb.mxu0 %v2398_v10  ;;  %913 = vmatpush.bf16.msrb.mxu2 %v2404_v47  ;;  %3203 = vst [vmem:[#allocation34_spill] sm:$0xff] %v2425_v22  ;;  %v1796_v47 = vld [vmem:[#allocation5 + $0x268] sm:$0xf0]  ;;  %v1506_v15 = vld [vmem:[#allocation5 + $0x8] sm:$0xf]  ;;  %v2436_v31 = vor.u32 %v2085_v1, %v1794_v40  ;;  %v2438_v32 = vor.u32 %v2017_v11, %v1540_v13 }
  0x40   :  { %3202 = vst [vmem:[#allocation33_spill] sm:$0xff] %v2422_v48  ;;  %839 = vmatmul.bf16.vlgmr.msra.gmra.mxu0 %v2411_v37  ;;  %852 = vmatmul.bf16.vlgmr.msra.gmra.mxu1 %v2413_v41  ;;  %v2013_v49 = vld [vmem:[#allocation5 + $0x24] sm:$0xf0]  ;;  %v2009_v10 = vld [vmem:[#allocation5 + $0xc] sm:$0xf] }
  0x41   :  { %900 = vmatpush.bf16.msrb.mxu1 %v2402_v42  ;;  %926 = vmatpush.bf16.msrb.mxu3 %v2409_v24  ;;  %v2081_v42 = vld [vmem:[#allocation5 + $0x24c] sm:$0xf]  ;;  %3204 = vst [vmem:[#allocation35_spill] sm:$0xff] %v2431_v26  ;;  %v1762_v36 = vld [vmem:[#allocation5 + $0x208] sm:$0xf] }
  0x42   :  { %3205 = vst [vmem:[#allocation36_spill] sm:$0xff] %v2436_v31  ;;  %v2077_v24 = vld [vmem:[#allocation5 + $0x224] sm:$0xf0]  ;;  %v1508_v0 = vld [vmem:[#allocation5 + $0x28] sm:$0xf0] }
  0x43   :  { %888 = vmatpush.bf16.msrb.mxu0 %v2416_v53  ;;  %914 = vmatpush.bf16.msrb.mxu2 %v2422_v48  ;;  %3206 = vst [vmem:[#allocation37_spill] sm:$0xff] %v2438_v32  ;;  %v2441_v53 = vor.u32 %v2081_v42, %v1796_v47  ;;  %v2073_v63 = vld [vmem:[#allocation5 + $0x20c] sm:$0xf]  ;;  %v2070_v18 = vld [vmem:[#allocation5 + $0x1ec] sm:$0xf0]  ;;  %v2444_v48 = vor.u32 %v2013_v49, %v1506_v15 }
  0x44   :  { %v1764_v20 = vld [vmem:[#allocation5 + $0x228] sm:$0xf0]  ;;  %v1994_v2 = vld [vmem:[#allocation5 + $0x3d0] sm:$0xf]  ;;  %v2066_v1 = vld [vmem:[#allocation5 + $0x1d4] sm:$0xf]  ;;  %v2448_v13 = vor.u32 %v2077_v24, %v1762_v36  ;;  %v2450_v42 = vor.u32 %v2009_v10, %v1508_v0 }
  0x45   :  { %901 = vmatpush.bf16.msrb.mxu1 %v2420_v54  ;;  %927 = vmatpush.bf16.msrb.mxu3 %v2425_v22  ;;  %3207 = vst [vmem:[#allocation38_spill] sm:$0xff] %v2441_v53  ;;  %v2134_v40 = vld [vmem:[#allocation5 + $0x3ec] sm:$0xf0]  ;;  %v1740_v11 = vld [vmem:[#allocation5 + $0x1f0] sm:$0xf0]  ;;  %v2453_v54 = vor.u32 %v2073_v63, %v1764_v20 }
  0x46   :  { %3208 = vst [vmem:[#allocation39_spill] sm:$0xff] %v2444_v48  ;;  %v2130_v47 = vld [vmem:[#allocation5 + $0x3d4] sm:$0xf]  ;;  %v2457_v15 = vor.u32 %v2134_v40, %v1994_v2  ;;  %v2459_v49 = vor.u32 %v2066_v1, %v1740_v11  ;;  %v1706_v61 = vld [vmem:[#allocation5 + $0x190] sm:$0xf] }
  0x47   :  { %889 = vmatpush.bf16.msrb.mxu0 %v2431_v26  ;;  %915 = vmatpush.bf16.msrb.mxu2 %v2438_v32  ;;  %3209 = vst [vmem:[#allocation40_spill] sm:$0xff] %v2448_v13  ;;  %v1996_v22 = vld [vmem:[#allocation5 + $0x3f0] sm:$0xf0]  ;;  %v2455_v26 = vor.u32 %v2070_v18, %v1738_v19  ;;  %v1962_v60 = vld [vmem:[#allocation5 + $0x390] sm:$0xf] }
  0x48   :  { %3210 = vst [vmem:[#allocation41_spill] sm:$0xff] %v2450_v42  ;;  %v2462_v24 = vor.u32 %v2130_v47, %v1996_v22  ;;  %v2126_v10 = vld [vmem:[#allocation5 + $0x3ac] sm:$0xf0]  ;;  %v2058_v36 = vld [vmem:[#allocation5 + $0x194] sm:$0xf] }
  0x49   :  { %902 = vmatpush.bf16.msrb.mxu1 %v2436_v31  ;;  %928 = vmatpush.bf16.msrb.mxu3 %v2441_v53  ;;  %3211 = vst [vmem:[#allocation42_spill] sm:$0xff] %v2453_v54  ;;  %v2062_v31 = vld [vmem:[#allocation5 + $0x1ac] sm:$0xf0]  ;;  %v1708_v0 = vld [vmem:[#allocation5 + $0x1b0] sm:$0xf0]  ;;  %v2472_v20 = vor.u32 %v2126_v10, %v1962_v60 }
  0x4a   :  { %3212 = vst [vmem:[#allocation43_spill] sm:$0xff] %v2455_v26  ;;  %v2122_v18 = vld [vmem:[#allocation5 + $0x394] sm:$0xf]  ;;  %v2468_v2 = vor.u32 %v2062_v31, %v1706_v61  ;;  %v2474_v22 = vor.u32 %v2058_v36, %v1708_v0  ;;  %v1674_v63 = vld [vmem:[#allocation5 + $0x150] sm:$0xf] }
  0x4b   :  { %3213 = vst [vmem:[#allocation44_spill] sm:$0xff] %v2457_v15  ;;  %890 = vmatpush.bf16.msrb.mxu0 %v2444_v48  ;;  %916 = vmatpush.bf16.msrb.mxu2 %v2450_v42  ;;  %v1964_v19 = vld [vmem:[#allocation5 + $0x3b0] sm:$0xf0]  ;;  %v2054_v40 = vld [vmem:[#allocation5 + $0x16c] sm:$0xf0] }
  0x4c   :  { %3214 = vst [vmem:[#allocation45_spill] sm:$0xff] %v2459_v49  ;;  %v1930_v1 = vld [vmem:[#allocation5 + $0x350] sm:$0xf]  ;;  %v2477_v11 = vor.u32 %v2122_v18, %v1964_v19  ;;  %v2114_v61 = vld [vmem:[#allocation5 + $0x354] sm:$0xf] }
  0x4d   :  { %3215 = vst [vmem:[#allocation46_spill] sm:$0xff] %v2462_v24  ;;  %903 = vmatpush.bf16.msrb.mxu1 %v2448_v13  ;;  %929 = vmatpush.bf16.msrb.mxu3 %v2453_v54  ;;  %v2118_v47 = vld [vmem:[#allocation5 + $0x36c] sm:$0xf0]  ;;  %v2050_v54 = vld [vmem:[#allocation5 + $0x154] sm:$0xf] }
  0x4e   :  { %3216 = vst [vmem:[#allocation47_spill] sm:$0xff] %v2468_v2  ;;  %v1932_v31 = vld [vmem:[#allocation5 + $0x370] sm:$0xf0]  ;;  %917 = vmatmul.bf16.vlgmr.msrb.gmra.mxu2 %v2411_v37  ;;  %v2485_v60 = vor.u32 %v2118_v47, %v1930_v1  ;;  %v1642_v36 = vld [vmem:[#allocation5 + $0x110] sm:$0xf] }
  0x4f   :  { %935 = vmatpush.bf16.msra.mxu0 %v2455_v26  ;;  %961 = vmatpush.bf16.msra.mxu2 %v2459_v49  ;;  %3217 = vst [vmem:[#allocation48_spill] sm:$0xff] %v2472_v20  ;;  %v1676_v26 = vld [vmem:[#allocation5 + $0x170] sm:$0xf0]  ;;  %v2046_v0 = vld [vmem:[#allocation5 + $0x12c] sm:$0xf0]  ;;  %v2490_v19 = vor.u32 %v2114_v61, %v1932_v31 }
  0x50   :  { %3218 = vst [vmem:[#allocation49_spill] sm:$0xff] %v2474_v22  ;;  %v2487_v10 = vor.u32 %v2050_v54, %v1676_v26  ;;  %v1898_v18 = vld [vmem:[#allocation5 + $0x310] sm:$0xf]  ;;  %891 = vmatmul.bf16.vlgmr.msrb.gmra.mxu0 %v2411_v37  ;;  %930 = vmatmul.bf16.vlgmr.msrb.gmra.mxu3 %v2413_v41  ;;  %v2496_v54 = vor.u32 %v2046_v0, %v1642_v36  ;;  %v2034_v49 = vld [vmem:[#allocation5 + $0xd4] sm:$0xf] }
  0x51   :  { %948 = vmatpush.bf16.msra.mxu1 %v2457_v15  ;;  %974 = vmatpush.bf16.msra.mxu3 %v2462_v24  ;;  %3219 = vst [vmem:[#allocation50_spill] sm:$0xff] %v2477_v11  ;;  %v2480_v15 = vor.u32 %v2054_v40, %v1674_v63  ;;  %v2042_v63 = vld [vmem:[#allocation5 + $0x114] sm:$0xf]  ;;  %v1610_v47 = vld [vmem:[#allocation5 + $0xd0] sm:$0xf] }
  0x52   :  { %3221 = vst [vmem:[#allocation52_spill] sm:$0xff] %v2485_v60  ;;  %v1644_v40 = vld [vmem:[#allocation5 + $0x130] sm:$0xf0]  ;;  %904 = vmatmul.bf16.vlgmr.msrb.gmra.mxu1 %v2413_v41  ;;  %v2038_v61 = vld [vmem:[#allocation5 + $0xec] sm:$0xf0] }
  0x53   :  { %936 = vmatpush.bf16.msra.mxu0 %v2468_v2  ;;  %3220 = vst [vmem:[#allocation51_spill] sm:$0xff] %v2480_v15  ;;  %962 = vmatpush.bf16.msra.mxu2 %v2474_v22  ;;  %v2110_v2 = vld [vmem:[#allocation5 + $0x32c] sm:$0xf0]  ;;  %v2106_v24 = vld [vmem:[#allocation5 + $0x314] sm:$0xf]  ;;  %v2502_v1 = vor.u32 %v2042_v63, %v1644_v40 }
  0x54   :  { %3222 = vst [vmem:[#allocation53_spill] sm:$0xff] %v2487_v10  ;;  %v2500_v26 = vor.u32 %v2110_v2, %v1898_v18  ;;  %v1866_v31 = vld [vmem:[#allocation5 + $0x2d0] sm:$0xf]  ;;  %v2098_v36 = vld [vmem:[#allocation5 + $0x2d4] sm:$0xf] }
  0x55   :  { %949 = vmatpush.bf16.msra.mxu1 %v2472_v20  ;;  %975 = vmatpush.bf16.msra.mxu3 %v2477_v11  ;;  %3223 = vst [vmem:[#allocation54_spill] sm:$0xff] %v2490_v19  ;;  %v1900_v20 = vld [vmem:[#allocation5 + $0x330] sm:$0xf0]  ;;  %v2102_v22 = vld [vmem:[#allocation5 + $0x2ec] sm:$0xf0] }
  0x56   :  { %3224 = vst [vmem:[#allocation55_spill] sm:$0xff] %v2496_v54  ;;  %v2505_v11 = vor.u32 %v2106_v24, %v1900_v20  ;;  %v1868_v0 = vld [vmem:[#allocation5 + $0x2f0] sm:$0xf0]  ;;  %v2512_v2 = vor.u32 %v2102_v22, %v1866_v31  ;;  %v1578_v63 = vld [vmem:[#allocation5 + $0x90] sm:$0xf] }
  0x57   :  { %937 = vmatpush.bf16.msra.mxu0 %v2480_v15  ;;  %963 = vmatpush.bf16.msra.mxu2 %v2487_v10  ;;  %3225 = vst [vmem:[#allocation56_spill] sm:$0xff] %v2500_v26  ;;  %v1612_v15 = vld [vmem:[#allocation5 + $0xf0] sm:$0xf0]  ;;  %v2030_v24 = vld [vmem:[#allocation5 + $0xac] sm:$0xf0]  ;;  %v2517_v40 = vor.u32 %v2098_v36, %v1868_v0 }
  0x58   :  { %3226 = vst [vmem:[#allocation57_spill] sm:$0xff] %v2502_v1  ;;  %v2514_v18 = vor.u32 %v2034_v49, %v1612_v15  ;;  %v1834_v20 = vld [vmem:[#allocation5 + $0x290] sm:$0xf]  ;;  %v2026_v10 = vld [vmem:[#allocation5 + $0x94] sm:$0xf] }
  0x59   :  { %950 = vmatpush.bf16.msra.mxu1 %v2485_v60  ;;  %976 = vmatpush.bf16.msra.mxu3 %v2490_v19  ;;  %3227 = vst [vmem:[#allocation58_spill] sm:$0xff] %v2505_v11  ;;  %v2508_v60 = vor.u32 %v2038_v61, %v1610_v47  ;;  %v2094_v19 = vld [vmem:[#allocation5 + $0x2ac] sm:$0xf0]  ;;  %v2090_v47 = vld [vmem:[#allocation5 + $0x294] sm:$0xf] }
  0x5a   :  { %3229 = vst [vmem:[#allocation60_spill] sm:$0xff] %v2512_v2  ;;  %v1836_v61 = vld [vmem:[#allocation5 + $0x2b0] sm:$0xf0]  ;;  %v2524_v15 = vor.u32 %v2094_v19, %v1834_v20  ;;  %v1546_v22 = vld [vmem:[#allocation5 + $0x50] sm:$0xf] }
  0x5b   :  { %938 = vmatpush.bf16.msra.mxu0 %v2496_v54  ;;  %3228 = vst [vmem:[#allocation59_spill] sm:$0xff] %v2508_v60  ;;  %964 = vmatpush.bf16.msra.mxu2 %v2502_v1  ;;  %v1580_v54 = vld [vmem:[#allocation5 + $0xb0] sm:$0xf0]  ;;  %v2022_v31 = vld [vmem:[#allocation5 + $0x6c] sm:$0xf0]  ;;  %v2529_v0 = vor.u32 %v2090_v47, %v1836_v61 }
  0x5c   :  { %3230 = vst [vmem:[#allocation61_spill] sm:$0xff] %v2514_v18  ;;  %v2526_v49 = vor.u32 %v2026_v10, %v1580_v54  ;;  %v1802_v36 = vld [vmem:[#allocation5 + $0x250] sm:$0xf]  ;;  %v2018_v1 = vld [vmem:[#allocation5 + $0x54] sm:$0xf] }
  0x5d   :  { %951 = vmatpush.bf16.msra.mxu1 %v2500_v26  ;;  %977 = vmatpush.bf16.msra.mxu3 %v2505_v11  ;;  %3231 = vst [vmem:[#allocation62_spill] sm:$0xff] %v2517_v40  ;;  %v2520_v26 = vor.u32 %v2030_v24, %v1578_v63  ;;  %v2086_v11 = vld [vmem:[#allocation5 + $0x26c] sm:$0xf0]  ;;  %v2082_v63 = vld [vmem:[#allocation5 + $0x254] sm:$0xf] }
  0x5e   :  { %3233 = vst [vmem:[#allocation64_spill] sm:$0xff] %v2524_v15  ;;  %v1804_v24 = vld [vmem:[#allocation5 + $0x270] sm:$0xf0]  ;;  %v1514_v19 = vld [vmem:[#allocation5 + $0x10] sm:$0xf]  ;;  %v2536_v10 = vor.u32 %v2086_v11, %v1802_v36 }
  0x5f   :  { %939 = vmatpush.bf16.msra.mxu0 %v2508_v60  ;;  %3232 = vst [vmem:[#allocation63_spill] sm:$0xff] %v2520_v26  ;;  %965 = vmatpush.bf16.msra.mxu2 %v2514_v18  ;;  %v1548_v60 = vld [vmem:[#allocation5 + $0x70] sm:$0xf0]  ;;  %v2014_v20 = vld [vmem:[#allocation5 + $0x2c] sm:$0xf0]  ;;  %v2541_v18 = vor.u32 %v2082_v63, %v1804_v24 }
  0x60   :  { %3234 = vst [vmem:[#allocation65_spill] sm:$0xff] %v2526_v49  ;;  %v2538_v54 = vor.u32 %v2018_v1, %v1548_v60  ;;  %v1770_v47 = vld [vmem:[#allocation5 + $0x210] sm:$0xf]  ;;  %v1746_v42 = vld [vmem:[#allocation5 + $0x1d8] sm:$0xf] }
  0x61   :  { %952 = vmatpush.bf16.msra.mxu1 %v2512_v2  ;;  %978 = vmatpush.bf16.msra.mxu3 %v2517_v40  ;;  %3235 = vst [vmem:[#allocation66_spill] sm:$0xff] %v2529_v0  ;;  %v2532_v2 = vor.u32 %v2022_v31, %v1546_v22  ;;  %v2078_v61 = vld [vmem:[#allocation5 + $0x22c] sm:$0xf0]  ;;  %v2010_v40 = vld [vmem:[#allocation5 + $0x14] sm:$0xf] }
  0x62   :  { %3237 = vst [vmem:[#allocation68_spill] sm:$0xff] %v2536_v10  ;;  %v2074_v22 = vld [vmem:[#allocation5 + $0x214] sm:$0xf]  ;;  %v2071_v13 = vld [vmem:[#allocation5 + $0x1f4] sm:$0xf0]  ;;  %v2548_v36 = vor.u32 %v2078_v61, %v1770_v47 }
  0x63   :  { %940 = vmatpush.bf16.msra.mxu0 %v2520_v26  ;;  %3236 = vst [vmem:[#allocation67_spill] sm:$0xff] %v2532_v2  ;;  %966 = vmatpush.bf16.msra.mxu2 %v2526_v49  ;;  %v1516_v26 = vld [vmem:[#allocation5 + $0x30] sm:$0xf0]  ;;  %v2002_v48 = vld [vmem:[#allocation5 + $0x3d8] sm:$0xf]  ;;  %v2544_v49 = vor.u32 %v2014_v20, %v1514_v19 }
  0x64   :  { %3238 = vst [vmem:[#allocation69_spill] sm:$0xff] %v2538_v54  ;;  %v1772_v31 = vld [vmem:[#allocation5 + $0x230] sm:$0xf0]  ;;  %v2135_v11 = vld [vmem:[#allocation5 + $0x3f4] sm:$0xf0]  ;;  %v2550_v63 = vor.u32 %v2010_v40, %v1516_v26 }
  0x65   :  { %953 = vmatpush.bf16.msra.mxu1 %v2524_v15  ;;  %979 = vmatpush.bf16.msra.mxu3 %v2529_v0  ;;  %3239 = vst [vmem:[#allocation70_spill] sm:$0xff] %v2541_v18  ;;  %v2067_v60 = vld [vmem:[#allocation5 + $0x1dc] sm:$0xf]  ;;  %v2553_v15 = vor.u32 %v2074_v22, %v1772_v31  ;;  %v2557_v19 = vor.u32 %v2135_v11, %v2002_v48  ;;  %v1714_v53 = vld [vmem:[#allocation5 + $0x198] sm:$0xf] }
  0x66   :  { %3240 = vst [vmem:[#allocation71_spill] sm:$0xff] %v2544_v49  ;;  %v1748_v1 = vld [vmem:[#allocation5 + $0x1f8] sm:$0xf0]  ;;  %v1970_v32 = vld [vmem:[#allocation5 + $0x398] sm:$0xf] }
  0x67   :  { %941 = vmatpush.bf16.msra.mxu0 %v2532_v2  ;;  %967 = vmatpush.bf16.msra.mxu2 %v2538_v54  ;;  %3241 = vst [vmem:[#allocation72_spill] sm:$0xff] %v2548_v36  ;;  %v2131_v24 = vld [vmem:[#allocation5 + $0x3dc] sm:$0xf]  ;;  %v2555_v2 = vor.u32 %v2071_v13, %v1746_v42  ;;  %v2559_v20 = vor.u32 %v2067_v60, %v1748_v1  ;;  %v2127_v26 = vld [vmem:[#allocation5 + $0x3b4] sm:$0xf0] }
  0x68   :  { %3242 = vst [vmem:[#allocation73_spill] sm:$0xff] %v2550_v63  ;;  %v2004_v0 = vld [vmem:[#allocation5 + $0x3f8] sm:$0xf0]  ;;  %v1682_v31 = vld [vmem:[#allocation5 + $0x158] sm:$0xf] }
  0x69   :  { %954 = vmatpush.bf16.msra.mxu1 %v2536_v10  ;;  %980 = vmatpush.bf16.msra.mxu3 %v2541_v18  ;;  %3243 = vst [vmem:[#allocation74_spill] sm:$0xff] %v2553_v15  ;;  %v2063_v10 = vld [vmem:[#allocation5 + $0x1b4] sm:$0xf0]  ;;  %v2562_v47 = vor.u32 %v2131_v24, %v2004_v0  ;;  %v2059_v40 = vld [vmem:[#allocation5 + $0x19c] sm:$0xf]  ;;  %v2572_v0 = vor.u32 %v2127_v26, %v1970_v32 }
  0x6a   :  { %3244 = vst [vmem:[#allocation75_spill] sm:$0xff] %v2555_v2  ;;  %v1716_v61 = vld [vmem:[#allocation5 + $0x1b8] sm:$0xf0]  ;;  %v2568_v48 = vor.u32 %v2063_v10, %v1714_v53  ;;  %v2055_v11 = vld [vmem:[#allocation5 + $0x174] sm:$0xf0] }
  0x6b   :  { %3245 = vst [vmem:[#allocation76_spill] sm:$0xff] %v2557_v19  ;;  %942 = vmatpush.bf16.msra.mxu0 %v2544_v49  ;;  %968 = vmatpush.bf16.msra.mxu2 %v2550_v63  ;;  %v2123_v13 = vld [vmem:[#allocation5 + $0x39c] sm:$0xf]  ;;  %v2574_v22 = vor.u32 %v2059_v40, %v1716_v61  ;;  %v1938_v60 = vld [vmem:[#allocation5 + $0x358] sm:$0xf]  ;;  %v2583_v32 = vor.u32 %v2055_v11, %v1682_v31 }
  0x6c   :  { %3246 = vst [vmem:[#allocation77_spill] sm:$0xff] %v2559_v20  ;;  %v1972_v42 = vld [vmem:[#allocation5 + $0x3b8] sm:$0xf0]  ;;  %v2119_v24 = vld [vmem:[#allocation5 + $0x374] sm:$0xf0] }
  0x6d   :  { %3247 = vst [vmem:[#allocation78_spill] sm:$0xff] %v2562_v47  ;;  %955 = vmatpush.bf16.msra.mxu1 %v2548_v36  ;;  %981 = vmatpush.bf16.msra.mxu3 %v2553_v15  ;;  %v2577_v1 = vor.u32 %v2123_v13, %v1972_v42  ;;  %v2051_v15 = vld [vmem:[#allocation5 + $0x15c] sm:$0xf]  ;;  %v2588_v26 = vor.u32 %v2119_v24, %v1938_v60  ;;  %v1650_v61 = vld [vmem:[#allocation5 + $0x118] sm:$0xf] }
  0x6e   :  { %3248 = vst [vmem:[#allocation79_spill] sm:$0xff] %v2568_v48  ;;  %969 = vmatmul.bf16.vlgmr.msra.gmra.mxu2 %v2411_v37  ;;  %v2115_v53 = vld [vmem:[#allocation5 + $0x35c] sm:$0xf]  ;;  %943 = vmatmul.bf16.vlgmr.msra.gmra.mxu0 %v2411_v37  ;;  %v2047_v13 = vld [vmem:[#allocation5 + $0x134] sm:$0xf0] }
  0x6f   :  { %987 = vmatpush.bf16.msrb.mxu0 %v2555_v2  ;;  %1013 = vmatpush.bf16.msrb.mxu2 %v2559_v20  ;;  %3249 = vst [vmem:[#allocation80_spill] sm:$0xff] %v2572_v0  ;;  %v1684_v2 = vld [vmem:[#allocation5 + $0x178] sm:$0xf0]  ;;  %v1906_v42 = vld [vmem:[#allocation5 + $0x318] sm:$0xf] }
  0x70   :  { %3250 = vst [vmem:[#allocation81_spill] sm:$0xff] %v2574_v22  ;;  %v1940_v10 = vld [vmem:[#allocation5 + $0x378] sm:$0xf0]  ;;  %982 = vmatmul.bf16.vlgmr.msra.gmra.mxu3 %v2413_v41  ;;  %956 = vmatmul.bf16.vlgmr.msra.gmra.mxu1 %v2413_v41  ;;  %v2590_v40 = vor.u32 %v2051_v15, %v1684_v2  ;;  %v1618_v60 = vld [vmem:[#allocation5 + $0xd8] sm:$0xf] }
  0x71   :  { %1000 = vmatpush.bf16.msrb.mxu1 %v2557_v19  ;;  %1026 = vmatpush.bf16.msrb.mxu3 %v2562_v47  ;;  %3251 = vst [vmem:[#allocation82_spill] sm:$0xff] %v2577_v1  ;;  %v2593_v47 = vor.u32 %v2115_v53, %v1940_v10  ;;  %v2043_v31 = vld [vmem:[#allocation5 + $0x11c] sm:$0xf]  ;;  %v2039_v24 = vld [vmem:[#allocation5 + $0xf4] sm:$0xf0] }
  0x72   :  { %3252 = vst [vmem:[#allocation83_spill] sm:$0xff] %v2583_v32  ;;  %v1652_v11 = vld [vmem:[#allocation5 + $0x138] sm:$0xf0]  ;;  %v1874_v53 = vld [vmem:[#allocation5 + $0x2d8] sm:$0xf] }
  0x73   :  { %988 = vmatpush.bf16.msrb.mxu0 %v2568_v48  ;;  %1014 = vmatpush.bf16.msrb.mxu2 %v2574_v22  ;;  %3253 = vst [vmem:[#allocation84_spill] sm:$0xff] %v2588_v26  ;;  %v2111_v48 = vld [vmem:[#allocation5 + $0x334] sm:$0xf0]  ;;  %v2107_v20 = vld [vmem:[#allocation5 + $0x31c] sm:$0xf]  ;;  %v2602_v15 = vor.u32 %v2043_v31, %v1652_v11 }
  0x74   :  { %3254 = vst [vmem:[#allocation85_spill] sm:$0xff] %v2590_v40  ;;  %v1908_v19 = vld [vmem:[#allocation5 + $0x338] sm:$0xf0]  ;;  %v2600_v2 = vor.u32 %v2111_v48, %v1906_v42  ;;  %v1586_v31 = vld [vmem:[#allocation5 + $0x98] sm:$0xf] }
  0x75   :  { %1001 = vmatpush.bf16.msrb.mxu1 %v2572_v0  ;;  %1027 = vmatpush.bf16.msrb.mxu3 %v2577_v1  ;;  %3255 = vst [vmem:[#allocation86_spill] sm:$0xff] %v2593_v47  ;;  %v2596_v0 = vor.u32 %v2047_v13, %v1650_v61  ;;  %v2605_v10 = vor.u32 %v2107_v20, %v1908_v19  ;;  %v2103_v1 = vld [vmem:[#allocation5 + $0x2f4] sm:$0xf0]  ;;  %v2035_v22 = vld [vmem:[#allocation5 + $0xdc] sm:$0xf] }
  0x76   :  { %3257 = vst [vmem:[#allocation88_spill] sm:$0xff] %v2600_v2  ;;  %v2099_v61 = vld [vmem:[#allocation5 + $0x2dc] sm:$0xf]  ;;  %v2612_v48 = vor.u32 %v2103_v1, %v1874_v53  ;;  %v2031_v19 = vld [vmem:[#allocation5 + $0xb4] sm:$0xf0] }
  0x77   :  { %989 = vmatpush.bf16.msrb.mxu0 %v2583_v32  ;;  %3256 = vst [vmem:[#allocation87_spill] sm:$0xff] %v2596_v0  ;;  %1015 = vmatpush.bf16.msrb.mxu2 %v2590_v40  ;;  %v1620_v32 = vld [vmem:[#allocation5 + $0xf8] sm:$0xf0]  ;;  %v1842_v20 = vld [vmem:[#allocation5 + $0x298] sm:$0xf] }
  0x78   :  { %3258 = vst [vmem:[#allocation89_spill] sm:$0xff] %v2602_v15  ;;  %v1876_v13 = vld [vmem:[#allocation5 + $0x2f8] sm:$0xf0]  ;;  %v2614_v42 = vor.u32 %v2035_v22, %v1620_v32  ;;  %v1554_v32 = vld [vmem:[#allocation5 + $0x58] sm:$0xf] }
  0x79   :  { %1002 = vmatpush.bf16.msrb.mxu1 %v2588_v26  ;;  %1028 = vmatpush.bf16.msrb.mxu3 %v2593_v47  ;;  %3259 = vst [vmem:[#allocation90_spill] sm:$0xff] %v2605_v10  ;;  %v2608_v26 = vor.u32 %v2039_v24, %v1618_v60  ;;  %v2617_v11 = vor.u32 %v2099_v61, %v1876_v13  ;;  %v2095_v47 = vld [vmem:[#allocation5 + $0x2b4] sm:$0xf0]  ;;  %v2027_v40 = vld [vmem:[#allocation5 + $0x9c] sm:$0xf] }
  0x7a   :  { %3261 = vst [vmem:[#allocation92_spill] sm:$0xff] %v2612_v48  ;;  %v2091_v60 = vld [vmem:[#allocation5 + $0x29c] sm:$0xf]  ;;  %v2624_v22 = vor.u32 %v2095_v47, %v1842_v20  ;;  %v2023_v53 = vld [vmem:[#allocation5 + $0x74] sm:$0xf0] }
  0x7b   :  { %990 = vmatpush.bf16.msrb.mxu0 %v2596_v0  ;;  %3260 = vst [vmem:[#allocation91_spill] sm:$0xff] %v2608_v26  ;;  %1016 = vmatpush.bf16.msrb.mxu2 %v2602_v15  ;;  %v1588_v0 = vld [vmem:[#allocation5 + $0xb8] sm:$0xf0]  ;;  %v1810_v61 = vld [vmem:[#allocation5 + $0x258] sm:$0xf] }
  0x7c   :  { %3262 = vst [vmem:[#allocation93_spill] sm:$0xff] %v2614_v42  ;;  %v1844_v24 = vld [vmem:[#allocation5 + $0x2b8] sm:$0xf0]  ;;  %v2626_v1 = vor.u32 %v2027_v40, %v1588_v0  ;;  %v1522_v40 = vld [vmem:[#allocation5 + $0x18] sm:$0xf] }
  0x7d   :  { %1003 = vmatpush.bf16.msrb.mxu1 %v2600_v2  ;;  %1029 = vmatpush.bf16.msrb.mxu3 %v2605_v10  ;;  %3263 = vst [vmem:[#allocation94_spill] sm:$0xff] %v2617_v11  ;;  %v2620_v2 = vor.u32 %v2031_v19, %v1586_v31  ;;  %v2629_v13 = vor.u32 %v2091_v60, %v1844_v24  ;;  %v2087_v10 = vld [vmem:[#allocation5 + $0x274] sm:$0xf0]  ;;  %v2019_v15 = vld [vmem:[#allocation5 + $0x5c] sm:$0xf] }
  0x7e   :  { %3265 = vst [vmem:[#allocation96_spill] sm:$0xff] %v2624_v22  ;;  %v2083_v31 = vld [vmem:[#allocation5 + $0x25c] sm:$0xf]  ;;  %v2636_v47 = vor.u32 %v2087_v10, %v1810_v61  ;;  %v2015_v20 = vld [vmem:[#allocation5 + $0x34] sm:$0xf0]  ;;  %v3267_v61 = vld [vmem:[#allocation12_spill] sm:$0xff] }
  0x7f   :  { %991 = vmatpush.bf16.msrb.mxu0 %v2608_v26  ;;  %3264 = vst [vmem:[#allocation95_spill] sm:$0xff] %v2620_v2  ;;  %1017 = vmatpush.bf16.msrb.mxu2 %v2614_v42  ;;  %v1556_v26 = vld [vmem:[#allocation5 + $0x78] sm:$0xf0]  ;;  %v1778_v60 = vld [vmem:[#allocation5 + $0x218] sm:$0xf] }
  0x80   :  { %v1812_v19 = vld [vmem:[#allocation5 + $0x278] sm:$0xf0]  ;;  %v2638_v0 = vor.u32 %v2019_v15, %v1556_v26 }
  0x81   :  { %1004 = vmatpush.bf16.msrb.mxu1 %v2612_v48  ;;  %1030 = vmatpush.bf16.msrb.mxu3 %v2617_v11  ;;  %v2632_v48 = vor.u32 %v2023_v53, %v1554_v32  ;;  %v2641_v24 = vor.u32 %v2083_v31, %v1812_v19  ;;  %v2079_v11 = vld [vmem:[#allocation5 + $0x234] sm:$0xf0]  ;;  %v2011_v42 = vld [vmem:[#allocation5 + $0x1c] sm:$0xf]  ;;  %v3270_v19 = vld [vmem:[#allocation15_spill] sm:$0xff] }
  0x82   :  { %v2075_v32 = vld [vmem:[#allocation5 + $0x21c] sm:$0xf]  ;;  %v2648_v26 = vor.u32 %v2079_v11, %v1778_v60 }
  0x83   :  { %992 = vmatpush.bf16.msrb.mxu0 %v2620_v2  ;;  %1018 = vmatpush.bf16.msrb.mxu2 %v2626_v1  ;;  %v1524_v2 = vld [vmem:[#allocation5 + $0x38] sm:$0xf0] }
  0x84   :  { %v1780_v53 = vld [vmem:[#allocation5 + $0x238] sm:$0xf0]  ;;  %v2650_v15 = vor.u32 %v2011_v42, %v1524_v2 }
  0x85   :  { %1005 = vmatpush.bf16.msrb.mxu1 %v2624_v22  ;;  %1031 = vmatpush.bf16.msrb.mxu3 %v2629_v13  ;;  %v2644_v22 = vor.u32 %v2015_v20, %v1522_v40  ;;  %v2653_v10 = vor.u32 %v2075_v32, %v1780_v53  ;;  %v3269_v31 = vld [vmem:[#allocation14_spill] sm:$0xff]  ;;  %v3271_v40 = vld [vmem:[#allocation16_spill] sm:$0xff]  ;;  %v3272_v20 = vld [vmem:[#allocation17_spill] sm:$0xff] }
  0x86   :  { %v3273_v60 = vld [vmem:[#allocation18_spill] sm:$0xff]  ;;  %v3274_v32 = vld [vmem:[#allocation19_spill] sm:$0xff]  ;;  %v3275_v53 = vld [vmem:[#allocation20_spill] sm:$0xff] }
  0x87   :  { %993 = vmatpush.bf16.msrb.mxu0 %v2632_v48  ;;  %1019 = vmatpush.bf16.msrb.mxu2 %v2638_v0 }
  0x89   :  { %1006 = vmatpush.bf16.msrb.mxu1 %v2636_v47  ;;  %1032 = vmatpush.bf16.msrb.mxu3 %v2641_v24 }
  0x8b   :  { %994 = vmatpush.bf16.msrb.mxu0 %v2644_v22  ;;  %1020 = vmatpush.bf16.msrb.mxu2 %v2650_v15 }
  0x8d   :  { %1007 = vmatpush.bf16.msrb.mxu1 %v2648_v26  ;;  %1033 = vmatpush.bf16.msrb.mxu3 %v2653_v10 }
  0x8e   :  { %995 = vmatmul.bf16.vlgmr.msrb.gmra.mxu0 %v2411_v37  ;;  %1021 = vmatmul.bf16.vlgmr.msrb.gmra.mxu2 %v2411_v37  ;;  %v178_v37 = vunpack.c.l.bf16 %v2395_v4 }
  0x8f   :  { %1039 = vmatpush.bf16.msra.mxu0 %v2245_v3  ;;  %1065 = vmatpush.bf16.msra.mxu2 %v2249_v8 }
  0x90   :  { %1008 = vmatmul.bf16.vlgmr.msrb.gmra.mxu1 %v2413_v41  ;;  %1034 = vmatmul.bf16.vlgmr.msrb.gmra.mxu3 %v2413_v41  ;;  %v179_v41 = vunpack.c.h.bf16 %v2395_v4  ;;  %v180_v2 = vsub.f32 %v2386_v39, %v178_v37  ;;  %v3266_v39 = vld [vmem:[#allocation11_spill] sm:$0xff]  ;;  %v3276_v37 = vld [vmem:[#allocation22_spill] sm:$0xff] }
  0x91   :  { %1052 = vmatpush.bf16.msra.mxu1 %v2247_v7  ;;  %1078 = vmatpush.bf16.msra.mxu3 %v2252_v12 }
  0x92   :  { %v181_v42 = vsub.f32 %v2388_v30, %v179_v41  ;;  %v2696_v11 = vpack.c.bf16 %v180_v2, %v180_v2  ;;  %v3268_v30 = vld [vmem:[#allocation13_spill] sm:$0xff]  ;;  %v3277_v41 = vld [vmem:[#allocation23_spill] sm:$0xff]  ;;  %v3278_v2 = vld [vmem:[#allocation24_spill] sm:$0xff] }
  0x93   :  { %1040 = vmatpush.bf16.msra.mxu0 %v2256_v16  ;;  %1066 = vmatpush.bf16.msra.mxu2 %v2261_v21 }
  0x94   :  { %v2700_v4 = vpack.c.bf16 %v181_v42, %v181_v42  ;;  %v3279_v42 = vld [vmem:[#allocation25_spill] sm:$0xff] }
  0x95   :  { %1053 = vmatpush.bf16.msra.mxu1 %v2258_v17  ;;  %1079 = vmatpush.bf16.msra.mxu3 %v2263_v25 }
  0x97   :  { %1041 = vmatpush.bf16.msra.mxu0 %v2266_v29  ;;  %1067 = vmatpush.bf16.msra.mxu2 %v2272_v34 }
  0x99   :  { %1054 = vmatpush.bf16.msra.mxu1 %v2270_v33  ;;  %1080 = vmatpush.bf16.msra.mxu3 %v2275_v38 }
  0x9b   :  { %1042 = vmatpush.bf16.msra.mxu0 %v2278_v44  ;;  %1068 = vmatpush.bf16.msra.mxu2 %v2284_v46 }
  0x9d   :  { %1055 = vmatpush.bf16.msra.mxu1 %v2282_v45  ;;  %1081 = vmatpush.bf16.msra.mxu3 %v2287_v50 }
  0x9f   :  { %1043 = vmatpush.bf16.msra.mxu0 %v2290_v56  ;;  %1069 = vmatpush.bf16.msra.mxu2 %v2296_v58 }
  0xa1   :  { %1056 = vmatpush.bf16.msra.mxu1 %v2294_v57  ;;  %1082 = vmatpush.bf16.msra.mxu3 %v2299_v62 }
  0xa3   :  { %1044 = vmatpush.bf16.msra.mxu0 %v2302_v5  ;;  %1070 = vmatpush.bf16.msra.mxu2 %v2308_v9 }
  0xa5   :  { %1057 = vmatpush.bf16.msra.mxu1 %v2306_v6  ;;  %1083 = vmatpush.bf16.msra.mxu3 %v2311_v14 }
  0xa7   :  { %1045 = vmatpush.bf16.msra.mxu0 %v2314_v23  ;;  %1071 = vmatpush.bf16.msra.mxu2 %v2320_v28 }
  0xa9   :  { %1058 = vmatpush.bf16.msra.mxu1 %v2318_v27  ;;  %1084 = vmatpush.bf16.msra.mxu3 %v2323_v35 }
  0xab   :  { %1046 = vmatpush.bf16.msra.mxu0 %v2326_v43  ;;  %1072 = vmatpush.bf16.msra.mxu2 %v2332_v52 }
  0xad   :  { %1059 = vmatpush.bf16.msra.mxu1 %v2330_v51  ;;  %1085 = vmatpush.bf16.msra.mxu3 %v2335_v55 }
  0xae   :  { %1047 = vmatmul.bf16.vlgmr.msra.gmra.mxu0 %v2696_v11  ;;  %1073 = vmatmul.bf16.vlgmr.msra.gmra.mxu2 %v2696_v11 }
  0xaf   :  { %1091 = vmatpush.bf16.msrb.mxu0 %v2337_v59  ;;  %1117 = vmatpush.bf16.msrb.mxu2 %v3267_v61 }
  0xb0   :  { %1060 = vmatmul.bf16.vlgmr.msra.gmra.mxu1 %v2700_v4  ;;  %1086 = vmatmul.bf16.vlgmr.msra.gmra.mxu3 %v2700_v4 }
  0xb1   :  { %1104 = vmatpush.bf16.msrb.mxu1 %v3266_v39  ;;  %1130 = vmatpush.bf16.msrb.mxu3 %v3268_v30  ;;  %v3292_v30 = vld [vmem:[#allocation38_spill] sm:$0xff] }
  0xb3   :  { %1092 = vmatpush.bf16.msrb.mxu0 %v3269_v31  ;;  %1118 = vmatpush.bf16.msrb.mxu2 %v3271_v40  ;;  %v3280_v31 = vld [vmem:[#allocation26_spill] sm:$0xff]  ;;  %v3282_v40 = vld [vmem:[#allocation28_spill] sm:$0xff] }
  0xb5   :  { %1105 = vmatpush.bf16.msrb.mxu1 %v3270_v19  ;;  %1131 = vmatpush.bf16.msrb.mxu3 %v3272_v20  ;;  %v3281_v19 = vld [vmem:[#allocation27_spill] sm:$0xff]  ;;  %v3283_v20 = vld [vmem:[#allocation29_spill] sm:$0xff] }
  0xb7   :  { %1093 = vmatpush.bf16.msrb.mxu0 %v3273_v60  ;;  %1119 = vmatpush.bf16.msrb.mxu2 %v3275_v53  ;;  %v3284_v60 = vld [vmem:[#allocation30_spill] sm:$0xff]  ;;  %v3286_v53 = vld [vmem:[#allocation32_spill] sm:$0xff] }
  0xb9   :  { %1106 = vmatpush.bf16.msrb.mxu1 %v3274_v32  ;;  %1132 = vmatpush.bf16.msrb.mxu3 %v3276_v37  ;;  %v3285_v32 = vld [vmem:[#allocation31_spill] sm:$0xff]  ;;  %v3287_v37 = vld [vmem:[#allocation33_spill] sm:$0xff] }
  0xbb   :  { %1094 = vmatpush.bf16.msrb.mxu0 %v3277_v41  ;;  %1120 = vmatpush.bf16.msrb.mxu2 %v3279_v42  ;;  %v3288_v41 = vld [vmem:[#allocation34_spill] sm:$0xff] }
  0xbd   :  { %1107 = vmatpush.bf16.msrb.mxu1 %v3278_v2  ;;  %1133 = vmatpush.bf16.msrb.mxu3 %v3280_v31  ;;  %v3289_v2 = vld [vmem:[#allocation35_spill] sm:$0xff]  ;;  %v840_v42 = vpop.f32.mrf.mxu0  ;;  %v3290_v31 = vld [vmem:[#allocation36_spill] sm:$0xff] }
  0xbf   :  { %1095 = vmatpush.bf16.msrb.mxu0 %v3281_v19  ;;  %1121 = vmatpush.bf16.msrb.mxu2 %v3283_v20  ;;  %v3291_v19 = vld [vmem:[#allocation37_spill] sm:$0xff] }
  0xc1   :  { %1108 = vmatpush.bf16.msrb.mxu1 %v3282_v40  ;;  %1134 = vmatpush.bf16.msrb.mxu3 %v3284_v60  ;;  %v853_v40 = vpop.f32.mrf.mxu1  ;;  %v3294_v60 = vld [vmem:[#allocation39_spill] sm:$0xff]  ;;  %v879_v61 = vpop.f32.mrf.mxu3 }
  0xc2   :  { %v2735_v20 = vadd.f32 %v853_v40, %v840_v42  ;;  %v3302_v40 = vld [vmem:[#allocation46_spill] sm:$0xff] }
  0xc3   :  { %1096 = vmatpush.bf16.msrb.mxu0 %v3285_v32  ;;  %1122 = vmatpush.bf16.msrb.mxu2 %v3287_v37  ;;  %v3295_v32 = vld [vmem:[#allocation40_spill] sm:$0xff]  ;;  %v866_v37 = vpop.f32.mrf.mxu2 }
  0xc4   :  { %3293 = vst [vmem:[#allocation97_spill] sm:$0xff] %v2735_v20  ;;  %v2744_v39 = vadd.f32 %v879_v61, %v866_v37  ;;  %v3306_v61 = vld [vmem:[#allocation50_spill] sm:$0xff] }
  0xc5   :  { %1109 = vmatpush.bf16.msrb.mxu1 %v3286_v53  ;;  %1135 = vmatpush.bf16.msrb.mxu3 %v3288_v41  ;;  %v3296_v53 = vld [vmem:[#allocation41_spill] sm:$0xff]  ;;  %v3297_v41 = vld [vmem:[#allocation42_spill] sm:$0xff]  ;;  %v842_v42 = vpop.f32.mrf.mxu0 }
  0xc6   :  { %3301 = vst [vmem:[#allocation98_spill] sm:$0xff] %v2744_v39  ;;  %v3308_v42 = vld [vmem:[#allocation52_spill] sm:$0xff] }
  0xc7   :  { %1097 = vmatpush.bf16.msrb.mxu0 %v3289_v2  ;;  %1123 = vmatpush.bf16.msrb.mxu2 %v3291_v19  ;;  %v3298_v2 = vld [vmem:[#allocation43_spill] sm:$0xff]  ;;  %v3300_v19 = vld [vmem:[#allocation45_spill] sm:$0xff]  ;;  %v3312_v39 = vld [vmem:[#allocation56_spill] sm:$0xff] }
  0xc9   :  { %1110 = vmatpush.bf16.msrb.mxu1 %v3290_v31  ;;  %1136 = vmatpush.bf16.msrb.mxu3 %v3292_v30  ;;  %v3299_v31 = vld [vmem:[#allocation44_spill] sm:$0xff]  ;;  %v3311_v30 = vld [vmem:[#allocation55_spill] sm:$0xff] }
  0xcb   :  { %1098 = vmatpush.bf16.msrb.mxu0 %v3294_v60  ;;  %1124 = vmatpush.bf16.msrb.mxu2 %v3296_v53  ;;  %v855_v53 = vpop.f32.mrf.mxu1  ;;  %v868_v37 = vpop.f32.mrf.mxu2  ;;  %v3310_v60 = vld [vmem:[#allocation54_spill] sm:$0xff] }
  0xcc   :  { %v3315_v37 = vld [vmem:[#allocation58_spill] sm:$0xff] }
  0xcd   :  { %1111 = vmatpush.bf16.msrb.mxu1 %v3295_v32  ;;  %1137 = vmatpush.bf16.msrb.mxu3 %v3297_v41  ;;  %v3304_v41 = vld [vmem:[#allocation48_spill] sm:$0xff]  ;;  %v3309_v32 = vld [vmem:[#allocation53_spill] sm:$0xff]  ;;  %v892_v53 = vpop.f32.mrf.mxu0 }
  0xce   :  { %1099 = vmatmul.bf16.vlgmr.msrb.gmra.mxu0 %v2696_v11  ;;  %1125 = vmatmul.bf16.vlgmr.msrb.gmra.mxu2 %v2696_v11 }
  0xcf   :  { %1143 = vmatpush.bf16.msra.mxu0 %v3298_v2  ;;  %1169 = vmatpush.bf16.msra.mxu2 %v3300_v19  ;;  %v3303_v2 = vld [vmem:[#allocation47_spill] sm:$0xff]  ;;  %v881_v19 = vpop.f32.mrf.mxu3 }
  0xd0   :  { %1112 = vmatmul.bf16.vlgmr.msrb.gmra.mxu1 %v2700_v4  ;;  %1138 = vmatmul.bf16.vlgmr.msrb.gmra.mxu3 %v2700_v4  ;;  %v3316_v19 = vld [vmem:[#allocation59_spill] sm:$0xff] }
  0xd1   :  { %1156 = vmatpush.bf16.msra.mxu1 %v3299_v31  ;;  %1182 = vmatpush.bf16.msra.mxu3 %v3302_v40  ;;  %v3305_v31 = vld [vmem:[#allocation49_spill] sm:$0xff]  ;;  %v3307_v40 = vld [vmem:[#allocation51_spill] sm:$0xff] }
  0xd3   :  { %1144 = vmatpush.bf16.msra.mxu0 %v3303_v2  ;;  %1170 = vmatpush.bf16.msra.mxu2 %v3305_v31  ;;  %v905_v2 = vpop.f32.mrf.mxu1 }
  0xd4   :  { %v2762_v31 = vadd.f32 %v905_v2, %v892_v53  ;;  %v3321_v2 = vld [vmem:[#allocation64_spill] sm:$0xff]  ;;  %v3322_v53 = vld [vmem:[#allocation65_spill] sm:$0xff] }
  0xd5   :  { %1157 = vmatpush.bf16.msra.mxu1 %v3304_v41  ;;  %1183 = vmatpush.bf16.msra.mxu3 %v3306_v61  ;;  %v3313_v41 = vld [vmem:[#allocation57_spill] sm:$0xff]  ;;  %v894_v20 = vpop.f32.mrf.mxu0 }
  0xd6   :  { %3314 = vst [vmem:[#allocation99_spill] sm:$0xff] %v2762_v31  ;;  %v3324_v31 = vld [vmem:[#allocation67_spill] sm:$0xff]  ;;  %v3326_v20 = vld [vmem:[#allocation74_spill] sm:$0xff] }
  0xd7   :  { %1145 = vmatpush.bf16.msra.mxu0 %v3307_v40  ;;  %1171 = vmatpush.bf16.msra.mxu2 %v3309_v32  ;;  %v918_v40 = vpop.f32.mrf.mxu2  ;;  %v3318_v32 = vld [vmem:[#allocation61_spill] sm:$0xff]  ;;  %v931_v61 = vpop.f32.mrf.mxu3 }
  0xd9   :  { %1158 = vmatpush.bf16.msra.mxu1 %v3308_v42  ;;  %1184 = vmatpush.bf16.msra.mxu3 %v3310_v60  ;;  %v3317_v42 = vld [vmem:[#allocation60_spill] sm:$0xff]  ;;  %v3319_v60 = vld [vmem:[#allocation62_spill] sm:$0xff] }
  0xdb   :  { %1146 = vmatpush.bf16.msra.mxu0 %v3311_v30  ;;  %1172 = vmatpush.bf16.msra.mxu2 %v3313_v41  ;;  %v2769_v30 = vadd.f32 %v931_v61, %v918_v40  ;;  %v907_v41 = vpop.f32.mrf.mxu1  ;;  %v3328_v61 = vld [vmem:[#allocation76_spill] sm:$0xff] }
  0xdc   :  { %v3327_v41 = vld [vmem:[#allocation75_spill] sm:$0xff] }
  0xdd   :  { %1159 = vmatpush.bf16.msra.mxu1 %v3312_v39  ;;  %1185 = vmatpush.bf16.msra.mxu3 %v3315_v37  ;;  %v3320_v39 = vld [vmem:[#allocation63_spill] sm:$0xff]  ;;  %v3323_v37 = vld [vmem:[#allocation66_spill] sm:$0xff] }
  0xdf   :  { %1147 = vmatpush.bf16.msra.mxu0 %v3316_v19  ;;  %1173 = vmatpush.bf16.msra.mxu2 %v3318_v32  ;;  %v920_v19 = vpop.f32.mrf.mxu2  ;;  %v933_v40 = vpop.f32.mrf.mxu3 }
  0xe0   :  { %v3329_v19 = vld [vmem:[#allocation77_spill] sm:$0xff]  ;;  %v3331_v40 = vld [vmem:[#allocation79_spill] sm:$0xff] }
  0xe1   :  { %1160 = vmatpush.bf16.msra.mxu1 %v3317_v42  ;;  %1186 = vmatpush.bf16.msra.mxu3 %v3319_v60  ;;  %v3325_v42 = vld [vmem:[#allocation68_spill] sm:$0xff] }
  0xe3   :  { %1148 = vmatpush.bf16.msra.mxu0 %v3320_v39  ;;  %1174 = vmatpush.bf16.msra.mxu2 %v3322_v53  ;;  %v3344_v53 = vld [vmem:[#allocation92_spill] sm:$0xff] }
  0xe5   :  { %1161 = vmatpush.bf16.msra.mxu1 %v3321_v2  ;;  %1187 = vmatpush.bf16.msra.mxu3 %v3323_v37 }
  0xe7   :  { %1149 = vmatpush.bf16.msra.mxu0 %v3324_v31  ;;  %1175 = vmatpush.bf16.msra.mxu2 %v2538_v54  ;;  %v3339_v31 = vld [vmem:[#allocation87_spill] sm:$0xff] }
  0xe9   :  { %1162 = vmatpush.bf16.msra.mxu1 %v3325_v42  ;;  %1188 = vmatpush.bf16.msra.mxu3 %v2541_v18  ;;  %v3330_v42 = vld [vmem:[#allocation78_spill] sm:$0xff] }
  0xea   :  { %v3338_v18 = vld [vmem:[#allocation86_spill] sm:$0xff] }
  0xeb   :  { %1150 = vmatpush.bf16.msra.mxu0 %v2544_v49  ;;  %1176 = vmatpush.bf16.msra.mxu2 %v2550_v63  ;;  %v3332_v63 = vld [vmem:[#allocation80_spill] sm:$0xff] }
  0xed   :  { %1163 = vmatpush.bf16.msra.mxu1 %v2548_v36  ;;  %1189 = vmatpush.bf16.msra.mxu3 %v3326_v20  ;;  %v3333_v20 = vld [vmem:[#allocation81_spill] sm:$0xff]  ;;  %v957_v49 = vpop.f32.mrf.mxu1 }
  0xee   :  { %1151 = vmatmul.bf16.vlgmr.msra.gmra.mxu0 %v2696_v11  ;;  %1177 = vmatmul.bf16.vlgmr.msra.gmra.mxu2 %v2696_v11  ;;  %v3337_v36 = vld [vmem:[#allocation85_spill] sm:$0xff] }
  0xef   :  { %1195 = vmatpush.bf16.msrb.mxu0 %v3327_v41  ;;  %1221 = vmatpush.bf16.msrb.mxu2 %v3329_v19  ;;  %v3334_v41 = vld [vmem:[#allocation82_spill] sm:$0xff]  ;;  %v944_v19 = vpop.f32.mrf.mxu0 }
  0xf0   :  { %1164 = vmatmul.bf16.vlgmr.msra.gmra.mxu1 %v2700_v4  ;;  %1190 = vmatmul.bf16.vlgmr.msra.gmra.mxu3 %v2700_v4  ;;  %v2799_v54 = vadd.f32 %v957_v49, %v944_v19  ;;  %v3346_v19 = vld [vmem:[#allocation94_spill] sm:$0xff] }
  0xf1   :  { %1208 = vmatpush.bf16.msrb.mxu1 %v3328_v61  ;;  %1234 = vmatpush.bf16.msrb.mxu3 %v3330_v42  ;;  %v3335_v61 = vld [vmem:[#allocation83_spill] sm:$0xff]  ;;  %v3336_v42 = vld [vmem:[#allocation84_spill] sm:$0xff] }
  0xf3   :  { %1196 = vmatpush.bf16.msrb.mxu0 %v3331_v40  ;;  %1222 = vmatpush.bf16.msrb.mxu2 %v3333_v20  ;;  %v3340_v40 = vld [vmem:[#allocation88_spill] sm:$0xff]  ;;  %v970_v20 = vpop.f32.mrf.mxu2 }
  0xf5   :  { %1209 = vmatpush.bf16.msrb.mxu1 %v3332_v63  ;;  %1235 = vmatpush.bf16.msrb.mxu3 %v3334_v41  ;;  %v3341_v63 = vld [vmem:[#allocation89_spill] sm:$0xff]  ;;  %v3342_v41 = vld [vmem:[#allocation90_spill] sm:$0xff]  ;;  %v959_v49 = vpop.f32.mrf.mxu1 }
  0xf7   :  { %1197 = vmatpush.bf16.msrb.mxu0 %v3335_v61  ;;  %1223 = vmatpush.bf16.msrb.mxu2 %v3337_v36  ;;  %v983_v61 = vpop.f32.mrf.mxu3  ;;  %v946_v36 = vpop.f32.mrf.mxu0 }
  0xf8   :  { %v2805_v37 = vadd.f32 %v983_v61, %v970_v20  ;;  %v3364_v36 = vld [vmem:[#allocation25_spill] sm:$0xff] }
  0xf9   :  { %1210 = vmatpush.bf16.msrb.mxu1 %v3336_v42  ;;  %1236 = vmatpush.bf16.msrb.mxu3 %v3338_v18  ;;  %v3343_v42 = vld [vmem:[#allocation91_spill] sm:$0xff]  ;;  %v3345_v18 = vld [vmem:[#allocation93_spill] sm:$0xff] }
  0xfb   :  { %1198 = vmatpush.bf16.msrb.mxu0 %v3339_v31  ;;  %1224 = vmatpush.bf16.msrb.mxu2 %v3341_v63  ;;  %v3347_v31 = vld [vmem:[#allocation95_spill] sm:$0xff] }
  0xfd   :  { %1211 = vmatpush.bf16.msrb.mxu1 %v3340_v40  ;;  %1237 = vmatpush.bf16.msrb.mxu3 %v3342_v41  ;;  %v3348_v40 = vld [vmem:[#allocation96_spill] sm:$0xff]  ;;  %v972_v41 = vpop.f32.mrf.mxu2 }
  0xfe   :  { %v3366_v41 = vld [vmem:[#allocation98_spill] sm:$0xff] }
  0xff   :  { %1199 = vmatpush.bf16.msrb.mxu0 %v3343_v42  ;;  %1225 = vmatpush.bf16.msrb.mxu2 %v3345_v18  ;;  %v985_v20 = vpop.f32.mrf.mxu3 }
 0x101   :  { %1212 = vmatpush.bf16.msrb.mxu1 %v3344_v53  ;;  %1238 = vmatpush.bf16.msrb.mxu3 %v3346_v19 }
 0x103   :  { %1200 = vmatpush.bf16.msrb.mxu0 %v3347_v31  ;;  %1226 = vmatpush.bf16.msrb.mxu2 %v2626_v1 }
 0x105   :  { %1213 = vmatpush.bf16.msrb.mxu1 %v3348_v40  ;;  %1239 = vmatpush.bf16.msrb.mxu3 %v2629_v13 }
 0x107   :  { %1201 = vmatpush.bf16.msrb.mxu0 %v2632_v48  ;;  %1227 = vmatpush.bf16.msrb.mxu2 %v2638_v0 }
 0x109   :  { %1214 = vmatpush.bf16.msrb.mxu1 %v2636_v47  ;;  %1240 = vmatpush.bf16.msrb.mxu3 %v2641_v24 }
 0x10b   :  { %1202 = vmatpush.bf16.msrb.mxu0 %v2644_v22  ;;  %1228 = vmatpush.bf16.msrb.mxu2 %v2650_v15 }
 0x10d   :  { %1215 = vmatpush.bf16.msrb.mxu1 %v2648_v26  ;;  %1241 = vmatpush.bf16.msrb.mxu3 %v2653_v10 }
 0x10e   :  { %1203 = vmatmul.bf16.vlgmr.msrb.gmra.mxu0 %v2696_v11  ;;  %1229 = vmatmul.bf16.vlgmr.msrb.gmra.mxu2 %v2696_v11  ;;  %v3365_v11 = vld [vmem:[#allocation26_spill] sm:$0xff] }
 0x10f   :  { %1254 = vmatpush.bf16.msra.mxu0 %v2245_v3  ;;  %1280 = vmatpush.bf16.msra.mxu2 %v2249_v8  ;;  %v996_v3 = vpop.f32.mrf.mxu0 }
 0x110   :  { %1216 = vmatmul.bf16.vlgmr.msrb.gmra.mxu1 %v2700_v4  ;;  %1242 = vmatmul.bf16.vlgmr.msrb.gmra.mxu3 %v2700_v4 }
 0x111   :  { %1267 = vmatpush.bf16.msra.mxu1 %v2247_v7  ;;  %1293 = vmatpush.bf16.msra.mxu3 %v2252_v12  ;;  %v1009_v7 = vpop.f32.mrf.mxu1  ;;  %v1022_v12 = vpop.f32.mrf.mxu2 }
 0x112   :  { %v2838_v8 = vadd.f32 %v1009_v7, %v996_v3  ;;  %v3367_v3 = vld [vmem:[#allocation27_spill] sm:$0xff] }
 0x113   :  { %1255 = vmatpush.bf16.msra.mxu0 %v2256_v16  ;;  %1281 = vmatpush.bf16.msra.mxu2 %v2261_v21 }
 0x115   :  { %1268 = vmatpush.bf16.msra.mxu1 %v2258_v17  ;;  %1294 = vmatpush.bf16.msra.mxu3 %v2263_v25  ;;  %v1035_v17 = vpop.f32.mrf.mxu3 }
 0x116   :  { %v2846_v21 = vadd.f32 %v1035_v17, %v1022_v12  ;;  %v3368_v12 = vld [vmem:[#allocation28_spill] sm:$0xff] }
 0x117   :  { %1256 = vmatpush.bf16.msra.mxu0 %v2266_v29  ;;  %1282 = vmatpush.bf16.msra.mxu2 %v2272_v34  ;;  %v998_v16 = vpop.f32.mrf.mxu0  ;;  %v3349_v34 = vld [vmem:[#allocation21_spill] sm:$0xff] }
 0x118   :  { %v3369_v16 = vld [vmem:[#allocation29_spill] sm:$0xff] }
 0x119   :  { %1269 = vmatpush.bf16.msra.mxu1 %v2270_v33  ;;  %1295 = vmatpush.bf16.msra.mxu3 %v2275_v38  ;;  %v1011_v25 = vpop.f32.mrf.mxu1  ;;  %v1024_v29 = vpop.f32.mrf.mxu2  ;;  %v1248_v38 = vunpack.c.l.b16 %v3349_v34 }
 0x11a   :  { %v3370_v25 = vld [vmem:[#allocation30_spill] sm:$0xff]  ;;  %v3371_v29 = vld [vmem:[#allocation31_spill] sm:$0xff] }
 0x11b   :  { %1257 = vmatpush.bf16.msra.mxu0 %v2278_v44  ;;  %1283 = vmatpush.bf16.msra.mxu2 %v2284_v46  ;;  %v1249_v44 = vunpack.c.h.b16 %v3349_v34  ;;  %v3373_v34 = vld [vmem:[#allocation33_spill] sm:$0xff] }
 0x11d   :  { %1270 = vmatpush.bf16.msra.mxu1 %v2282_v45  ;;  %1296 = vmatpush.bf16.msra.mxu3 %v2287_v50  ;;  %v1037_v33 = vpop.f32.mrf.mxu3  ;;  %v2862_v45 = vpack.c.b16 %v1248_v38, %v1248_v38  ;;  %v2866_v46 = vpack.c.b16 %v1249_v44, %v1249_v44  ;;  %v3350_v50 = vld [vmem:[#allocation11_spill] sm:$0xff]  ;;  %v3374_v38 = vld [vmem:[#allocation34_spill] sm:$0xff] }
 0x11e   :  { %v3372_v33 = vld [vmem:[#allocation32_spill] sm:$0xff] }
 0x11f   :  { %1258 = vmatpush.bf16.msra.mxu0 %v2290_v56  ;;  %1284 = vmatpush.bf16.msra.mxu2 %v2296_v58  ;;  %v3351_v56 = vld [vmem:[#allocation12_spill] sm:$0xff]  ;;  %v3353_v58 = vld [vmem:[#allocation14_spill] sm:$0xff] }
 0x121   :  { %1271 = vmatpush.bf16.msra.mxu1 %v2294_v57  ;;  %1297 = vmatpush.bf16.msra.mxu3 %v2299_v62  ;;  %v3352_v57 = vld [vmem:[#allocation13_spill] sm:$0xff]  ;;  %v3354_v62 = vld [vmem:[#allocation15_spill] sm:$0xff] }
 0x123   :  { %1259 = vmatpush.bf16.msra.mxu0 %v2302_v5  ;;  %1285 = vmatpush.bf16.msra.mxu2 %v2308_v9  ;;  %v3355_v5 = vld [vmem:[#allocation16_spill] sm:$0xff] }
 0x125   :  { %1272 = vmatpush.bf16.msra.mxu1 %v2306_v6  ;;  %1298 = vmatpush.bf16.msra.mxu3 %v2311_v14  ;;  %v3356_v6 = vld [vmem:[#allocation17_spill] sm:$0xff]  ;;  %v3357_v14 = vld [vmem:[#allocation18_spill] sm:$0xff] }
 0x127   :  { %1260 = vmatpush.bf16.msra.mxu0 %v2314_v23  ;;  %1286 = vmatpush.bf16.msra.mxu2 %v2320_v28  ;;  %v3358_v23 = vld [vmem:[#allocation97_spill] sm:$0xff] }
 0x129   :  { %1273 = vmatpush.bf16.msra.mxu1 %v2318_v27  ;;  %1299 = vmatpush.bf16.msra.mxu3 %v2323_v35  ;;  %v3359_v35 = vld [vmem:[#allocation19_spill] sm:$0xff] }
 0x12b   :  { %1261 = vmatpush.bf16.msra.mxu0 %v2326_v43  ;;  %1287 = vmatpush.bf16.msra.mxu2 %v2332_v52  ;;  %v1048_v9 = vpop.f32.mrf.mxu0  ;;  %v3360_v43 = vld [vmem:[#allocation20_spill] sm:$0xff] }
 0x12c   :  { %v1049_v27 = vadd.f32 %v1048_v9, %v3358_v23  ;;  %v3381_v9 = vld [vmem:[#allocation41_spill] sm:$0xff]  ;;  %v3383_v23 = vld [vmem:[#allocation43_spill] sm:$0xff] }
 0x12d   :  { %1274 = vmatpush.bf16.msra.mxu1 %v2330_v51  ;;  %1300 = vmatpush.bf16.msra.mxu3 %v2335_v55  ;;  %v1061_v28 = vpop.f32.mrf.mxu1  ;;  %v3361_v51 = vld [vmem:[#allocation22_spill] sm:$0xff]  ;;  %v3362_v55 = vld [vmem:[#allocation23_spill] sm:$0xff] }
 0x12e   :  { %1262 = vmatmul.bf16.vlgmr.msra.gmra.mxu0 %v2862_v45  ;;  %1288 = vmatmul.bf16.vlgmr.msra.gmra.mxu2 %v2862_v45  ;;  %v2886_v52 = vadd.f32 %v1061_v28, %v1049_v27  ;;  %v3384_v27 = vld [vmem:[#allocation44_spill] sm:$0xff]  ;;  %v3385_v28 = vld [vmem:[#allocation45_spill] sm:$0xff] }
 0x12f   :  { %1306 = vmatpush.bf16.msrb.mxu0 %v2337_v59  ;;  %1332 = vmatpush.bf16.msrb.mxu2 %v3351_v56  ;;  %v3363_v59 = vld [vmem:[#allocation24_spill] sm:$0xff]  ;;  %v3375_v56 = vld [vmem:[#allocation35_spill] sm:$0xff] }
 0x130   :  { %1275 = vmatmul.bf16.vlgmr.msra.gmra.mxu1 %v2866_v46  ;;  %1301 = vmatmul.bf16.vlgmr.msra.gmra.mxu3 %v2866_v46 }
 0x131   :  { %1319 = vmatpush.bf16.msrb.mxu1 %v3350_v50  ;;  %1345 = vmatpush.bf16.msrb.mxu3 %v3352_v57  ;;  %v1074_v4 = vpop.f32.mrf.mxu2  ;;  %v3376_v57 = vld [vmem:[#allocation36_spill] sm:$0xff] }
 0x132   :  { %v1075_v61 = vadd.f32 %v1074_v4, %v3366_v41  ;;  %v3392_v4 = vld [vmem:[#allocation99_spill] sm:$0xff] }
 0x133   :  { %1307 = vmatpush.bf16.msrb.mxu0 %v3353_v58  ;;  %1333 = vmatpush.bf16.msrb.mxu2 %v3355_v5  ;;  %v1087_v49 = vpop.f32.mrf.mxu3  ;;  %v1050_v20 = vpop.f32.mrf.mxu0  ;;  %v3377_v58 = vld [vmem:[#allocation37_spill] sm:$0xff]  ;;  %v3379_v5 = vld [vmem:[#allocation39_spill] sm:$0xff] }
 0x134   :  { %v2896_v17 = vadd.f32 %v1087_v49, %v1075_v61  ;;  %v3393_v49 = vld [vmem:[#allocation52_spill] sm:$0xff]  ;;  %v3394_v20 = vld [vmem:[#allocation53_spill] sm:$0xff] }
 0x135   :  { %1320 = vmatpush.bf16.msrb.mxu1 %v3354_v62  ;;  %1346 = vmatpush.bf16.msrb.mxu3 %v3356_v6  ;;  %v1063_v7 = vpop.f32.mrf.mxu1  ;;  %v3378_v62 = vld [vmem:[#allocation38_spill] sm:$0xff]  ;;  %v3380_v6 = vld [vmem:[#allocation40_spill] sm:$0xff] }
 0x137   :  { %1308 = vmatpush.bf16.msrb.mxu0 %v3357_v14  ;;  %1334 = vmatpush.bf16.msrb.mxu2 %v3360_v43  ;;  %v3382_v14 = vld [vmem:[#allocation42_spill] sm:$0xff]  ;;  %v3387_v43 = vld [vmem:[#allocation47_spill] sm:$0xff] }
 0x139   :  { %1321 = vmatpush.bf16.msrb.mxu1 %v3359_v35  ;;  %1347 = vmatpush.bf16.msrb.mxu3 %v3361_v51  ;;  %v1076_v44 = vpop.f32.mrf.mxu2  ;;  %v3386_v35 = vld [vmem:[#allocation46_spill] sm:$0xff]  ;;  %v3388_v51 = vld [vmem:[#allocation48_spill] sm:$0xff] }
 0x13b   :  { %1309 = vmatpush.bf16.msrb.mxu0 %v3362_v55  ;;  %1335 = vmatpush.bf16.msrb.mxu2 %v3364_v36  ;;  %v1089_v50 = vpop.f32.mrf.mxu3  ;;  %v3389_v55 = vld [vmem:[#allocation49_spill] sm:$0xff] }
 0x13c   :  { %v3400_v50 = vld [vmem:[#allocation59_spill] sm:$0xff] }
 0x13d   :  { %1322 = vmatpush.bf16.msrb.mxu1 %v3363_v59  ;;  %1348 = vmatpush.bf16.msrb.mxu3 %v3365_v11  ;;  %v3390_v59 = vld [vmem:[#allocation50_spill] sm:$0xff]  ;;  %v3391_v11 = vld [vmem:[#allocation51_spill] sm:$0xff] }
 0x13f   :  { %1310 = vmatpush.bf16.msrb.mxu0 %v3367_v3  ;;  %1336 = vmatpush.bf16.msrb.mxu2 %v3369_v16  ;;  %v3395_v3 = vld [vmem:[#allocation54_spill] sm:$0xff]  ;;  %v3397_v16 = vld [vmem:[#allocation56_spill] sm:$0xff] }
 0x141   :  { %1323 = vmatpush.bf16.msrb.mxu1 %v3368_v12  ;;  %1349 = vmatpush.bf16.msrb.mxu3 %v3370_v25  ;;  %v3396_v12 = vld [vmem:[#allocation55_spill] sm:$0xff]  ;;  %v3398_v25 = vld [vmem:[#allocation57_spill] sm:$0xff] }
 0x143   :  { %1311 = vmatpush.bf16.msrb.mxu0 %v3371_v29  ;;  %1337 = vmatpush.bf16.msrb.mxu2 %v3373_v34  ;;  %v3399_v29 = vld [vmem:[#allocation58_spill] sm:$0xff] }
 0x145   :  { %1324 = vmatpush.bf16.msrb.mxu1 %v3372_v33  ;;  %1350 = vmatpush.bf16.msrb.mxu3 %v3374_v38 }
 0x147   :  { %1312 = vmatpush.bf16.msrb.mxu0 %v3375_v56  ;;  %1338 = vmatpush.bf16.msrb.mxu2 %v3377_v58 }
 0x149   :  { %1325 = vmatpush.bf16.msrb.mxu1 %v3376_v57  ;;  %1351 = vmatpush.bf16.msrb.mxu3 %v3378_v62  ;;  %v3401_v57 = vld [vmem:[#allocation60_spill] sm:$0xff]  ;;  %v3402_v62 = vld [vmem:[#allocation65_spill] sm:$0xff] }
 0x14b   :  { %1313 = vmatpush.bf16.msrb.mxu0 %v3379_v5  ;;  %1339 = vmatpush.bf16.msrb.mxu2 %v3381_v9  ;;  %v1100_v36 = vpop.f32.mrf.mxu0  ;;  %v3404_v9 = vld [vmem:[#allocation67_spill] sm:$0xff] }
 0x14c   :  { %v1101_v41 = vadd.f32 %v1100_v36, %v3392_v4  ;;  %v3418_v36 = vld [vmem:[#allocation81_spill] sm:$0xff] }
 0x14d   :  { %1326 = vmatpush.bf16.msrb.mxu1 %v3380_v6  ;;  %1352 = vmatpush.bf16.msrb.mxu3 %v3382_v14  ;;  %v1113_v61 = vpop.f32.mrf.mxu1  ;;  %v3405_v14 = vld [vmem:[#allocation68_spill] sm:$0xff] }
 0x14e   :  { %1314 = vmatmul.bf16.vlgmr.msrb.gmra.mxu0 %v2862_v45  ;;  %1340 = vmatmul.bf16.vlgmr.msrb.gmra.mxu2 %v2862_v45  ;;  %v2928_v7 = vadd.f32 %v1113_v61, %v1101_v41  ;;  %v3420_v41 = vld [vmem:[#allocation83_spill] sm:$0xff] }
 0x14f   :  { %1358 = vmatpush.bf16.msra.mxu0 %v3383_v23  ;;  %1384 = vmatpush.bf16.msra.mxu2 %v3385_v28  ;;  %v3406_v23 = vld [vmem:[#allocation69_spill] sm:$0xff]  ;;  %v3412_v28 = vld [vmem:[#allocation75_spill] sm:$0xff] }
 0x150   :  { %1327 = vmatmul.bf16.vlgmr.msrb.gmra.mxu1 %v2866_v46  ;;  %1353 = vmatmul.bf16.vlgmr.msrb.gmra.mxu3 %v2866_v46 }
 0x151   :  { %1371 = vmatpush.bf16.msra.mxu1 %v3384_v27  ;;  %1397 = vmatpush.bf16.msra.mxu3 %v3386_v35  ;;  %v1126_v33 = vpop.f32.mrf.mxu2  ;;  %v3408_v27 = vld [vmem:[#allocation71_spill] sm:$0xff]  ;;  %v3413_v35 = vld [vmem:[#allocation76_spill] sm:$0xff] }
 0x152   :  { %v1127_v34 = vadd.f32 %v1126_v33, %v2769_v30  ;;  %v3403_v30 = vld [vmem:[#allocation66_spill] sm:$0xff] }
 0x153   :  { %1359 = vmatpush.bf16.msra.mxu0 %v3387_v43  ;;  %1385 = vmatpush.bf16.msra.mxu2 %v3389_v55  ;;  %v1139_v38 = vpop.f32.mrf.mxu3  ;;  %v1102_v44 = vpop.f32.mrf.mxu0  ;;  %v3414_v43 = vld [vmem:[#allocation77_spill] sm:$0xff]  ;;  %v3416_v55 = vld [vmem:[#allocation79_spill] sm:$0xff]  ;;  %v3426_v33 = vld [vmem:[#allocation90_spill] sm:$0xff] }
 0x154   :  { %v2938_v58 = vadd.f32 %v1139_v38, %v1127_v34 }
 0x155   :  { %1372 = vmatpush.bf16.msra.mxu1 %v3388_v51  ;;  %1398 = vmatpush.bf16.msra.mxu3 %v3390_v59  ;;  %v1115_v56 = vpop.f32.mrf.mxu1  ;;  %v3415_v51 = vld [vmem:[#allocation78_spill] sm:$0xff]  ;;  %v3417_v59 = vld [vmem:[#allocation80_spill] sm:$0xff] }
 0x157   :  { %1360 = vmatpush.bf16.msra.mxu0 %v3391_v11  ;;  %1386 = vmatpush.bf16.msra.mxu2 %v3394_v20  ;;  %v3419_v11 = vld [vmem:[#allocation82_spill] sm:$0xff]  ;;  %v3421_v20 = vld [vmem:[#allocation84_spill] sm:$0xff] }
 0x159   :  { %1373 = vmatpush.bf16.msra.mxu1 %v3393_v49  ;;  %1399 = vmatpush.bf16.msra.mxu3 %v3395_v3  ;;  %v1128_v5 = vpop.f32.mrf.mxu2  ;;  %v3422_v3 = vld [vmem:[#allocation85_spill] sm:$0xff] }
 0x15b   :  { %1361 = vmatpush.bf16.msra.mxu0 %v3396_v12  ;;  %1387 = vmatpush.bf16.msra.mxu2 %v3398_v25  ;;  %v1141_v6 = vpop.f32.mrf.mxu3  ;;  %v3423_v12 = vld [vmem:[#allocation86_spill] sm:$0xff]  ;;  %v3424_v25 = vld [vmem:[#allocation87_spill] sm:$0xff] }
 0x15d   :  { %1374 = vmatpush.bf16.msra.mxu1 %v3397_v16  ;;  %1400 = vmatpush.bf16.msra.mxu3 %v3399_v29  ;;  %v3425_v29 = vld [vmem:[#allocation88_spill] sm:$0xff] }
 0x15f   :  { %1362 = vmatpush.bf16.msra.mxu0 %v3400_v50  ;;  %1388 = vmatpush.bf16.msra.mxu2 %v3318_v32  ;;  %v3407_v32 = vld [vmem:[#allocation70_spill] sm:$0xff] }
 0x161   :  { %1375 = vmatpush.bf16.msra.mxu1 %v3401_v57  ;;  %1401 = vmatpush.bf16.msra.mxu3 %v3319_v60  ;;  %v3409_v60 = vld [vmem:[#allocation72_spill] sm:$0xff] }
 0x163   :  { %1363 = vmatpush.bf16.msra.mxu0 %v3320_v39  ;;  %1389 = vmatpush.bf16.msra.mxu2 %v3402_v62  ;;  %v3410_v39 = vld [vmem:[#allocation73_spill] sm:$0xff] }
 0x165   :  { %1376 = vmatpush.bf16.msra.mxu1 %v3321_v2  ;;  %1402 = vmatpush.bf16.msra.mxu3 %v3403_v30  ;;  %v3411_v2 = vld [vmem:[#allocation74_spill] sm:$0xff] }
 0x167   :  { %1364 = vmatpush.bf16.msra.mxu0 %v3404_v9  ;;  %1390 = vmatpush.bf16.msra.mxu2 %v3406_v23 }
 0x169   :  { %1377 = vmatpush.bf16.msra.mxu1 %v3405_v14  ;;  %1403 = vmatpush.bf16.msra.mxu3 %v3407_v32 }
 0x16b   :  { %1365 = vmatpush.bf16.msra.mxu0 %v3408_v27  ;;  %1391 = vmatpush.bf16.msra.mxu2 %v3410_v39  ;;  %v1152_v4 = vpop.f32.mrf.mxu0 }
 0x16c   :  { %v1153_v61 = vadd.f32 %v1152_v4, %v2799_v54 }
 0x16d   :  { %1378 = vmatpush.bf16.msra.mxu1 %v3409_v60  ;;  %1404 = vmatpush.bf16.msra.mxu3 %v3411_v2  ;;  %v1165_v49 = vpop.f32.mrf.mxu1 }
 0x16e   :  { %1366 = vmatmul.bf16.vlgmr.msra.gmra.mxu0 %v2862_v45  ;;  %1392 = vmatmul.bf16.vlgmr.msra.gmra.mxu2 %v2862_v45  ;;  %v2970_v16 = vadd.f32 %v1165_v49, %v1153_v61 }
 0x16f   :  { %1410 = vmatpush.bf16.msrb.mxu0 %v3412_v28  ;;  %1436 = vmatpush.bf16.msrb.mxu2 %v3414_v43 }
 0x170   :  { %1379 = vmatmul.bf16.vlgmr.msra.gmra.mxu1 %v2866_v46  ;;  %1405 = vmatmul.bf16.vlgmr.msra.gmra.mxu3 %v2866_v46 }
 0x171   :  { %1423 = vmatpush.bf16.msrb.mxu1 %v3413_v35  ;;  %1449 = vmatpush.bf16.msrb.mxu3 %v3415_v51  ;;  %v1178_v34 = vpop.f32.mrf.mxu2 }
 0x172   :  { %v1179_v54 = vadd.f32 %v1178_v34, %v2805_v37 }
 0x173   :  { %1411 = vmatpush.bf16.msrb.mxu0 %v3416_v55  ;;  %1437 = vmatpush.bf16.msrb.mxu2 %v3418_v36  ;;  %v1191_v38 = vpop.f32.mrf.mxu3  ;;  %v1154_v44 = vpop.f32.mrf.mxu0 }
 0x174   :  { %v2980_v56 = vadd.f32 %v1191_v38, %v1179_v54 }
 0x175   :  { %1424 = vmatpush.bf16.msrb.mxu1 %v3417_v59  ;;  %1450 = vmatpush.bf16.msrb.mxu3 %v3419_v11  ;;  %v1167_v50 = vpop.f32.mrf.mxu1 }
 0x177   :  { %1412 = vmatpush.bf16.msrb.mxu0 %v3420_v41  ;;  %1438 = vmatpush.bf16.msrb.mxu2 %v3422_v3 }
 0x179   :  { %1425 = vmatpush.bf16.msrb.mxu1 %v3421_v20  ;;  %1451 = vmatpush.bf16.msrb.mxu3 %v3423_v12 }
 0x17b   :  { %1413 = vmatpush.bf16.msrb.mxu0 %v3424_v25  ;;  %1439 = vmatpush.bf16.msrb.mxu2 %v3341_v63  ;;  %v1180_v63 = vpop.f32.mrf.mxu2  ;;  %v1193_v37 = vpop.f32.mrf.mxu3 }
 0x17d   :  { %1426 = vmatpush.bf16.msrb.mxu1 %v3425_v29  ;;  %1452 = vmatpush.bf16.msrb.mxu3 %v3426_v33 }
 0x17f   :  { %1414 = vmatpush.bf16.msrb.mxu0 %v3343_v42  ;;  %1440 = vmatpush.bf16.msrb.mxu2 %v3345_v18 }
 0x181   :  { %1427 = vmatpush.bf16.msrb.mxu1 %v3344_v53  ;;  %1453 = vmatpush.bf16.msrb.mxu3 %v3346_v19 }
 0x183   :  { %1415 = vmatpush.bf16.msrb.mxu0 %v3347_v31  ;;  %1441 = vmatpush.bf16.msrb.mxu2 %v2626_v1 }
 0x185   :  { %1428 = vmatpush.bf16.msrb.mxu1 %v3348_v40  ;;  %1454 = vmatpush.bf16.msrb.mxu3 %v2629_v13 }
 0x187   :  { %1416 = vmatpush.bf16.msrb.mxu0 %v2632_v48  ;;  %1442 = vmatpush.bf16.msrb.mxu2 %v2638_v0 }
 0x189   :  { %1429 = vmatpush.bf16.msrb.mxu1 %v2636_v47  ;;  %1455 = vmatpush.bf16.msrb.mxu3 %v2641_v24 }
 0x18b   :  { %1417 = vmatpush.bf16.msrb.mxu0 %v2644_v22  ;;  %1443 = vmatpush.bf16.msrb.mxu2 %v2650_v15  ;;  %v1204_v18 = vpop.f32.mrf.mxu0 }
 0x18c   :  { %v1205_v48 = vadd.f32 %v1204_v18, %v2838_v8 }
 0x18d   :  { %1430 = vmatpush.bf16.msrb.mxu1 %v2648_v26  ;;  %1456 = vmatpush.bf16.msrb.mxu3 %v2653_v10  ;;  %v1217_v1 = vpop.f32.mrf.mxu1 }
 0x18e   :  { %1418 = vmatmul.bf16.vlgmr.msrb.gmra.mxu0 %v2862_v45  ;;  %1444 = vmatmul.bf16.vlgmr.msrb.gmra.mxu2 %v2862_v45  ;;  %v1218_v13 = vadd.f32 %v1217_v1, %v1205_v48 }
 0x190   :  { %1431 = vmatmul.bf16.vlgmr.msrb.gmra.mxu1 %v2866_v46  ;;  %1457 = vmatmul.bf16.vlgmr.msrb.gmra.mxu3 %v2866_v46 }
 0x191   :  { %v1230_v22 = vpop.f32.mrf.mxu2 }
 0x192   :  { %v1231_v47 = vadd.f32 %v1230_v22, %v2846_v21 }
 0x193   :  { %v1243_v0 = vpop.f32.mrf.mxu3  ;;  %v1206_v24 = vpop.f32.mrf.mxu0 }
 0x194   :  { %v1244_v15 = vadd.f32 %v1243_v0, %v1231_v47 }
 0x195   :  { %v1219_v26 = vpop.f32.mrf.mxu1 }
 0x199   :  { %v1232_v10 = vpop.f32.mrf.mxu2 }
 0x19b   :  { %v1245_v31 = vpop.f32.mrf.mxu3 }
 0x1ab   :  { %v1263_v42 = vpop.f32.mrf.mxu0 }
 0x1ad   :  { %v1276_v53 = vpop.f32.mrf.mxu1 }
 0x1ae   :  { %v1277_v40 = vadd.f32 %v1276_v53, %v1263_v42 }
 0x1b0   :  { %v1462_v19 = vadd.f32 %v1277_v40, %v2886_v52 }
 0x1b1   :  { %v1289_v45 = vpop.f32.mrf.mxu2 }
 0x1b2   :  { %1470 = vst [vmem:[#allocation7] sm:$0xff] %v1462_v19 }
 0x1b3   :  { %v1302_v46 = vpop.f32.mrf.mxu3  ;;  %v1265_v8 = vpop.f32.mrf.mxu0 }
 0x1b4   :  { %v1303_v57 = vadd.f32 %v1302_v46, %v1289_v45 }
 0x1b5   :  { %v1278_v62 = vpop.f32.mrf.mxu1 }
 0x1b6   :  { %v1463_v30 = vadd.f32 %v1303_v57, %v2896_v17 }
 0x1b8   :  { %1471 = vst [vmem:[#allocation7 + $0x8] sm:$0xff] %v1463_v30 }
 0x1b9   :  { %v1291_v21 = vpop.f32.mrf.mxu2 }
 0x1bb   :  { %v1304_v5 = vpop.f32.mrf.mxu3 }
 0x1cb   :  { %v1315_v6 = vpop.f32.mrf.mxu0 }
 0x1cd   :  { %v1328_v9 = vpop.f32.mrf.mxu1 }
 0x1ce   :  { %v1329_v14 = vadd.f32 %v1328_v9, %v1315_v6 }
 0x1d0   :  { %v1464_v23 = vadd.f32 %v1329_v14, %v2928_v7 }
 0x1d1   :  { %v1341_v32 = vpop.f32.mrf.mxu2 }
 0x1d2   :  { %1472 = vst [vmem:[#allocation7 + $0x10] sm:$0xff] %v1464_v23 }
 0x1d3   :  { %v1354_v27 = vpop.f32.mrf.mxu3  ;;  %v1317_v52 = vpop.f32.mrf.mxu0 }
 0x1d4   :  { %v1355_v60 = vadd.f32 %v1354_v27, %v1341_v32 }
 0x1d5   :  { %v1330_v39 = vpop.f32.mrf.mxu1 }
 0x1d6   :  { %v1465_v2 = vadd.f32 %v1355_v60, %v2938_v58 }
 0x1d8   :  { %1473 = vst [vmem:[#allocation7 + $0x18] sm:$0xff] %v1465_v2 }
 0x1d9   :  { %v1343_v28 = vpop.f32.mrf.mxu2 }
 0x1db   :  { %v1356_v35 = vpop.f32.mrf.mxu3 }
 0x1eb   :  { %v1367_v17 = vpop.f32.mrf.mxu0 }
 0x1ed   :  { %v1380_v43 = vpop.f32.mrf.mxu1 }
 0x1ee   :  { %v1381_v51 = vadd.f32 %v1380_v43, %v1367_v17 }
 0x1f0   :  { %v1466_v55 = vadd.f32 %v1381_v51, %v2970_v16 }
 0x1f1   :  { %v1393_v59 = vpop.f32.mrf.mxu2 }
 0x1f2   :  { %1474 = vst [vmem:[#allocation7 + $0x20] sm:$0xff] %v1466_v55 }
 0x1f3   :  { %v1406_v36 = vpop.f32.mrf.mxu3  ;;  %v1369_v7 = vpop.f32.mrf.mxu0 }
 0x1f4   :  { %v1407_v11 = vadd.f32 %v1406_v36, %v1393_v59 }
 0x1f5   :  { %v1382_v4 = vpop.f32.mrf.mxu1 }
 0x1f6   :  { %v1467_v41 = vadd.f32 %v1407_v11, %v2980_v56 }
 0x1f8   :  { %1475 = vst [vmem:[#allocation7 + $0x28] sm:$0xff] %v1467_v41 }
 0x1f9   :  { %v1395_v61 = vpop.f32.mrf.mxu2 }
 0x1fb   :  { %v1408_v49 = vpop.f32.mrf.mxu3 }
 0x20b   :  { %v1419_v58 = vpop.f32.mrf.mxu0 }
 0x20d   :  { %v1432_v20 = vpop.f32.mrf.mxu1 }
 0x20e   :  { %v1433_v3 = vadd.f32 %v1432_v20, %v1419_v58 }
 0x210   :  { %v1468_v12 = vadd.f32 %v1433_v3, %v1218_v13 }
 0x211   :  { %v1445_v25 = vpop.f32.mrf.mxu2 }
 0x212   :  { %1476 = vst [vmem:[#allocation7 + $0x30] sm:$0xff] %v1468_v12 }
 0x213   :  { %v1458_v29 = vpop.f32.mrf.mxu3  ;;  %v1421_v33 = vpop.f32.mrf.mxu0 }
 0x214   :  { %v1459_v16 = vadd.f32 %v1458_v29, %v1445_v25 }
 0x215   :  { %v1434_v34 = vpop.f32.mrf.mxu1 }
 0x216   :  { %v1469_v54 = vadd.f32 %v1459_v16, %v1244_v15 }
 0x218   :  { %1477 = vst [vmem:[#allocation7 + $0x38] sm:$0xff] %v1469_v54 }
 0x219   :  { %1488 = dma.vmem_to_hbm [thread:$0]  %s1484_s1, 1024, %s1486_s23, [#allocation4]   ;;  %v1447_v38 = vpop.f32.mrf.mxu2 }
 0x21b   :  { %v1460_v44 = vpop.f32.mrf.mxu3 }
 0x21c   :  { %2217 = dma.done.wait [#allocation4], 1024  }
 0x21d   :  { %2218 = vsyncadd [#allocation4], 4294966272 }
 0x21e   :  { %1493 = vsyncpa [#allocation3], 1 }
 0x21f   :  { %1494 = vsyncpa [#allocation6], 1 }
 0x220   :  { %1495 = vsyncpa [#allocation4], 1 }

</bundles_post_ra>
